<compile_context>
chip_gen: v5e
topology: v5e:2x2
jax: 0.10.0
libtpu: 0.0.40
codegen_flags: <defaults>
</compile_context>

<pallas_src>
import functools
import string

import jax
import jax.numpy as jnp
import numpy as np
from jax.experimental import pallas as pl
from jax.experimental.pallas import tpu as pltpu


def _round_up(a: int, b: int) -> int:
    return ((a + b - 1) // b) * b


def _ctc_greedy_kernel(probs_ref, out_ref, carry_ref, *, blank_index: int,
                       dense_out: bool):
    i = pl.program_id(0)

    # Initialize the cross-tile carry with a sentinel on the first grid step.
    @pl.when(i == 0)
    def _():
        carry_ref[...] = jnp.full((1, 1), -1, dtype=jnp.int32)

    probs = probs_ref[...]                      # (tile, C) float
    tile_t, c = probs.shape

    # --- argmax over classes (lanes), first-occurrence tie-break ----------
    col = jax.lax.broadcasted_iota(jnp.int32, (tile_t, c), 1)
    mx = jnp.max(probs, axis=-1, keepdims=True)                  # (tile, 1)
    big = jnp.int32(jnp.iinfo(jnp.int32).max)
    idx = jnp.min(jnp.where(probs == mx, col, big), axis=-1,
                  keepdims=True).astype(jnp.int32)               # (tile, 1)

    # --- unique_consecutive + drop blanks ---------------------------------
    # prev[t] = idx[t-1]; row 0 of this tile uses the carry from the previous
    # tile (or the -1 sentinel for the very first row of the sequence).
    prev = pltpu.roll(idx, shift=1, axis=0)
    row = jax.lax.broadcasted_iota(jnp.int32, (tile_t, 1), 0)
    prev = jnp.where(row == 0, carry_ref[...], prev)

    keep = (idx != prev) & (idx != jnp.int32(blank_index))

    # Packed result: kept class index, or -1 where the frame is dropped.
    packed = jnp.where(keep, idx, jnp.int32(-1))                 # (tile, 1)

    if dense_out:
        # Lane-dense store: relayout the column to (tile//128, 128) so the
        # output block is fully used and written back as one dense DMA.
        out_ref[...] = packed.reshape(out_ref.shape)
    else:
        out_ref[...] = packed

    # Carry this tile's last index into the next grid step (sequential grid).
    carry_ref[...] = idx[tile_t - 1:tile_t, :]


def _decode_packed(x, blank_index: int, tile_t: int, dense_out: bool,
                   pad_input: bool):
    """Runs the kernel; returns the packed int32 result (time-ordered when
    flattened row-major, length >= T, -1 marks dropped frames)."""
    T, C = x.shape

    # Tile sizing.  Dense path: tile % 128 == 0 (reshape + lane-dense block),
    # and a multiple of 1024 when there is more than one tile so the output
    # block's sublane dim (tile // 128) is a multiple of 8.
    if dense_out:
        t_q = _round_up(T, 128)
        tile = min(max(128, (tile_t // 128) * 128), t_q)
        if tile < t_q:                       # multi-tile
            tile = max(1024, (tile // 1024) * 1024)
    else:
        t_q = _round_up(T, 8)
        tile = min(max(8, (tile_t // 8) * 8), t_q)

    n_tiles = pl.cdiv(T, tile)

    if pad_input and n_tiles * tile != T:
        # Conservative fallback path only: full-copy pad so every block is
        # fully in bounds.  The primary path relies on partial last blocks.
        x = jnp.pad(x, ((0, n_tiles * tile - T), (0, 0)))

    kernel = functools.partial(_ctc_greedy_kernel, blank_index=blank_index,
                               dense_out=dense_out)

    if dense_out:
        out_shape = jax.ShapeDtypeStruct((n_tiles * (tile // 128), 128),
                                         jnp.int32)
        out_spec = pl.BlockSpec((tile // 128, 128), lambda i: (i, 0))
    else:
        out_shape = jax.ShapeDtypeStruct((n_tiles * tile, 1), jnp.int32)
        out_spec = pl.BlockSpec((tile, 1), lambda i: (i, 0))

    return pl.pallas_call(
        kernel,
        out_shape=out_shape,
        grid_spec=pltpu.PrefetchScalarGridSpec(
            num_scalar_prefetch=0,
            grid=(n_tiles,),
            in_specs=[pl.BlockSpec((tile, C), lambda i: (i, 0))],
            out_specs=out_spec,
            scratch_shapes=[pltpu.VMEM((1, 1), jnp.int32)],
        ),
        compiler_params=pltpu.CompilerParams(
            dimension_semantics=("arbitrary",),      # sequential prev-idx carry
            vmem_limit_bytes=48 * 1024 * 1024,       # > v5e's 16 MiB default
        ),
        cost_estimate=pl.CostEstimate(
            flops=2 * T * C,
            transcendentals=0,
            bytes_accessed=T * C * 4 + T * 4,
        ),
    )(x)


def greedy_ctc_decode(label_probabilities, labels, blank_index: int = 0,
                      tile_t: int = 8192) -> str:
    """Equivalent of GreedyCTCDecoder.forward (returns a Python str).

    argmax is invariant under softmax, so raw logits may be fed directly.
    """
    T, _ = label_probabilities.shape

    # Config ladder: best-performing first, previously proven config last.
    configs = (
        (True, tile_t, False),   # lane-dense out, big tile, no pad copy
        (True, 2048, True),      # lane-dense out, conservative tile, padded
        (False, 2048, True),     # column out, padded (proven baseline)
    )
    packed = None
    for k, (dense, tt, padded) in enumerate(configs):
        try:
            packed = jax.block_until_ready(
                _decode_packed(label_probabilities, blank_index, tt, dense,
                               padded))
            break
        except Exception:
            if k == len(configs) - 1:
                raise

    # Host-side glue (no Pallas equivalent): dynamic-length compaction and the
    # Python string join, both vectorized with NumPy.
    flat = np.asarray(jax.device_get(packed)).reshape(-1)[:T]
    kept = flat[flat >= 0]
    labels_arr = np.array(list(labels))
    return ''.join(labels_arr[kept].tolist())


def _reference_decode(probs_np, labels, blank_index=0) -> str:
    """Pure-numpy reference mirroring the PyTorch module."""
    indices = np.argmax(probs_np, axis=-1)
    uniq = [indices[0]] + [indices[t] for t in range(1, len(indices))
                           if indices[t] != indices[t - 1]]
    return ''.join(labels[int(i)] for i in uniq if int(i) != blank_index)


if __name__ == "__main__":
    # labels: blank "-" at index 0, then 26 letters + 5 punctuation/space = 32
    labels = "-" + string.ascii_lowercase + " '.,?"
    assert len(labels) == 32
    C = len(labels)
    key = jax.random.PRNGKey(0)

    cases = []

    # 1) Toy single-tile shapes (matching the module's intended small inputs).
    for T in (8, 50):
        key, sub = jax.random.split(key)
        logits = jax.random.normal(sub, (T, C), dtype=jnp.float32)
        cases.append((jax.nn.softmax(logits, axis=-1), 0, 8192))

    # 2) Constructed runs / blanks / an exact tie (first occurrence must win).
    seq = jnp.array([0, 0, 11, 11, 11, 0, 5, 5, 0, 0, 0, 19, 19, 2, 2,
                     2, 2, 0, 7, 0, 7], dtype=jnp.int32)
    probs = jax.nn.one_hot(seq, C, dtype=jnp.float32)
    probs = probs.at[4].set(0.0).at[4, 11].set(0.5).at[4, 23].set(0.5)
    cases.append((probs, 0, 8192))
    cases.append((probs, 5, 8192))           # non-default blank index

    # 3) Multi-tile path: 3 tiles of 1024 rows incl. a partial last tile, with
    #    a repeated class straddling the first tile boundary (tests the carry).
    key, sub = jax.random.split(key)
    logits = jax.random.normal(sub, (2500, C), dtype=jnp.float32)
    big_probs = jax.nn.softmax(logits, axis=-1)
    boundary_row = jax.nn.one_hot(jnp.int32(17), C, dtype=jnp.float32)
    big_probs = big_probs.at[1023].set(boundary_row).at[1024].set(boundary_row)
    cases.append((big_probs, 0, 1024))

    for probs, blank, tile_t in cases:
        got = greedy_ctc_decode(probs, labels, blank_index=blank,
                                tile_t=tile_t)
        want = _reference_decode(np.asarray(probs), labels, blank_index=blank)
        assert got == want, (
            f"T={probs.shape[0]} blank={blank}: pallas={got!r} ref={want!r}")

    print("KERNEL_OK")
</pallas_src>

<mosaic_0001>
module attributes {stable_mosaic.version = 11 : i64} {
  func.func @_ctc_greedy_kernel(%arg0: i32, %arg1: memref<128x32xf32, #tpu.memory_space<vmem>>, %arg2: memref<1x128xi32, #tpu.memory_space<vmem>>, %arg3: memref<1x1xi32, #tpu.memory_space<vmem>>) attributes {dimension_semantics = [#tpu.dimension_semantics<arbitrary>], iteration_bounds = array<i64: 1>, scalar_prefetch = 0 : i64, scratch_operands = 1 : i64, tpu.core_type = #tpu.core_type<tc>, window_params = [{transform_indices = @transform_0, window_bounds = array<i64: 128, 32>}, {transform_indices = @transform_1, window_bounds = array<i64: 1, 128>}]} {
    %c0_i32 = arith.constant 0 : i32
    %0 = arith.cmpi eq, %arg0, %c0_i32 : i32
    %1 = arith.extui %0 : i1 to i32
    %c0_i32_0 = arith.constant 0 : i32
    %2 = arith.cmpi ne, %1, %c0_i32_0 : i32
    scf.if %2 {
      %c-1_i32_11 = arith.constant -1 : i32
      %31 = vector.broadcast %c-1_i32_11 : i32 to vector<1x1xi32>
      %c0_12 = arith.constant 0 : index
      %c0_13 = arith.constant 0 : index
      %32 = vector.load %arg3[%c0_12, %c0_13] : memref<1x1xi32, #tpu.memory_space<vmem>>, vector<1x1xi32>
      tpu.vector_store %arg3[%c0_12, %c0_13], %31 {strides = array<i32>} : memref<1x1xi32, #tpu.memory_space<vmem>>, vector<1x1xi32>,
    } else {
    }
    %c0 = arith.constant 0 : index
    %c0_1 = arith.constant 0 : index
    %3 = vector.load %arg1[%c0, %c0_1] : memref<128x32xf32, #tpu.memory_space<vmem>>, vector<128x32xf32>
    %4 = tpu.iota {dimensions = array<i32: 1>} : vector<128x32xi32>
    %cst = arith.constant dense<0xFF800000> : vector<128xf32>
    %5 = vector.multi_reduction <maximumf>, %3, %cst [1] : vector<128x32xf32> to vector<128xf32>
    %6 = vector.shape_cast %5 : vector<128xf32> to vector<128x1xf32>
    %7 = vector.broadcast %6 : vector<128x1xf32> to vector<128x32xf32>
    %8 = arith.cmpf oeq, %3, %7 : vector<128x32xf32>
    %c2147483647_i32 = arith.constant 2147483647 : i32
    %9 = vector.broadcast %c2147483647_i32 : i32 to vector<128x32xi32>
    %10 = arith.select %8, %4, %9 : vector<128x32xi1>, vector<128x32xi32>
    %cst_2 = arith.constant dense<2147483647> : vector<128xi32>
    %11 = vector.multi_reduction <minsi>, %10, %cst_2 [1] : vector<128x32xi32> to vector<128xi32>
    %12 = vector.shape_cast %11 : vector<128xi32> to vector<128x1xi32>
    %c1_i32 = arith.constant 1 : i32
    %13 = tpu.dynamic_rotate %12 by %c1_i32 dim 0 : vector<128x1xi32>, i32 -> vector<128x1xi32>
    %14 = tpu.iota {dimensions = array<i32: 0>} : vector<128x1xi32>
    %c0_i32_3 = arith.constant 0 : i32
    %15 = vector.broadcast %c0_i32_3 : i32 to vector<128x1xi32>
    %16 = arith.cmpi eq, %14, %15 : vector<128x1xi32>
    %c0_4 = arith.constant 0 : index
    %c0_5 = arith.constant 0 : index
    %17 = vector.load %arg3[%c0_4, %c0_5] : memref<1x1xi32, #tpu.memory_space<vmem>>, vector<1x1xi32>
    %18 = vector.shape_cast %17 : vector<1x1xi32> to vector<1x1xi32>
    %19 = vector.broadcast %18 : vector<1x1xi32> to vector<128x1xi32>
    %20 = arith.select %16, %19, %13 : vector<128x1xi1>, vector<128x1xi32>
    %21 = arith.cmpi ne, %12, %20 : vector<128x1xi32>
    %c0_i32_6 = arith.constant 0 : i32
    %22 = vector.broadcast %c0_i32_6 : i32 to vector<128x1xi32>
    %23 = arith.cmpi ne, %12, %22 : vector<128x1xi32>
    %24 = arith.andi %21, %23 : vector<128x1xi1>
    %c-1_i32 = arith.constant -1 : i32
    %25 = vector.broadcast %c-1_i32 : i32 to vector<128x1xi32>
    %26 = arith.select %24, %12, %25 : vector<128x1xi1>, vector<128x1xi32>
    %27 = vector.shape_cast %26 : vector<128x1xi32> to vector<1x128xi32>
    %c0_7 = arith.constant 0 : index
    %c0_8 = arith.constant 0 : index
    %28 = vector.load %arg2[%c0_7, %c0_8] : memref<1x128xi32, #tpu.memory_space<vmem>>, vector<1x128xi32>
    tpu.vector_store %arg2[%c0_7, %c0_8], %27 {strides = array<i32>} : memref<1x128xi32, #tpu.memory_space<vmem>>, vector<1x128xi32>,
    %29 = vector.extract_strided_slice %12 {offsets = [127, 0], sizes = [1, 1], strides = [1, 1]} : vector<128x1xi32> to vector<1x1xi32>
    %c0_9 = arith.constant 0 : index
    %c0_10 = arith.constant 0 : index
    %30 = vector.load %arg3[%c0_9, %c0_10] : memref<1x1xi32, #tpu.memory_space<vmem>>, vector<1x1xi32>
    tpu.vector_store %arg3[%c0_9, %c0_10], %29 {strides = array<i32>} : memref<1x1xi32, #tpu.memory_space<vmem>>, vector<1x1xi32>,
    return
  }
  func.func @transform_0(%arg0: i32) -> (i32, i32) {
    %c0_i32 = arith.constant 0 : i32
    %c0_i32_0 = arith.constant 0 : i32
    return %arg0, %c0_i32 : i32, i32
  }
  func.func @transform_1(%arg0: i32) -> (i32, i32) {
    %c0_i32 = arith.constant 0 : i32
    %c0_i32_0 = arith.constant 0 : i32
    return %arg0, %c0_i32 : i32, i32
  }
}

module attributes {stable_mosaic.version = 11 : i64} {
  func.func @_ctc_greedy_kernel(%arg0: i32, %arg1: memref<128x32xf32, #tpu.memory_space<vmem>>, %arg2: memref<1x128xi32, #tpu.memory_space<vmem>>, %arg3: memref<1x1xi32, #tpu.memory_space<vmem>>) attributes {dimension_semantics = [#tpu.dimension_semantics<arbitrary>], iteration_bounds = array<i64: 1>, scalar_prefetch = 0 : i64, scratch_operands = 1 : i64, tpu.core_type = #tpu.core_type<tc>, window_params = [{transform_indices = @transform_0, window_bounds = array<i64: 128, 32>}, {transform_indices = @transform_1, window_bounds = array<i64: 1, 128>}]} {
    %c0_i32 = arith.constant 0 : i32
    %0 = arith.cmpi eq, %arg0, %c0_i32 : i32
    %1 = arith.extui %0 : i1 to i32
    %c0_i32_0 = arith.constant 0 : i32
    %2 = arith.cmpi ne, %1, %c0_i32_0 : i32
    scf.if %2 {
      %c-1_i32_11 = arith.constant -1 : i32
      %31 = vector.broadcast %c-1_i32_11 : i32 to vector<1x1xi32>
      %c0_12 = arith.constant 0 : index
      %c0_13 = arith.constant 0 : index
      %32 = vector.load %arg3[%c0_12, %c0_13] : memref<1x1xi32, #tpu.memory_space<vmem>>, vector<1x1xi32>
      tpu.vector_store %arg3[%c0_12, %c0_13], %31 {strides = array<i32>} : memref<1x1xi32, #tpu.memory_space<vmem>>, vector<1x1xi32>,
    } else {
    }
    %c0 = arith.constant 0 : index
    %c0_1 = arith.constant 0 : index
    %3 = vector.load %arg1[%c0, %c0_1] : memref<128x32xf32, #tpu.memory_space<vmem>>, vector<128x32xf32>
    %4 = tpu.iota {dimensions = array<i32: 1>} : vector<128x32xi32>
    %cst = arith.constant dense<0xFF800000> : vector<128xf32>
    %5 = vector.multi_reduction <maximumf>, %3, %cst [1] : vector<128x32xf32> to vector<128xf32>
    %6 = vector.shape_cast %5 : vector<128xf32> to vector<128x1xf32>
    %7 = vector.broadcast %6 : vector<128x1xf32> to vector<128x32xf32>
    %8 = arith.cmpf oeq, %3, %7 : vector<128x32xf32>
    %c2147483647_i32 = arith.constant 2147483647 : i32
    %9 = vector.broadcast %c2147483647_i32 : i32 to vector<128x32xi32>
    %10 = arith.select %8, %4, %9 : vector<128x32xi1>, vector<128x32xi32>
    %cst_2 = arith.constant dense<2147483647> : vector<128xi32>
    %11 = vector.multi_reduction <minsi>, %10, %cst_2 [1] : vector<128x32xi32> to vector<128xi32>
    %12 = vector.shape_cast %11 : vector<128xi32> to vector<128x1xi32>
    %c1_i32 = arith.constant 1 : i32
    %13 = tpu.dynamic_rotate %12 by %c1_i32 dim 0 : vector<128x1xi32>, i32 -> vector<128x1xi32>
    %14 = tpu.iota {dimensions = array<i32: 0>} : vector<128x1xi32>
    %c0_i32_3 = arith.constant 0 : i32
    %15 = vector.broadcast %c0_i32_3 : i32 to vector<128x1xi32>
    %16 = arith.cmpi eq, %14, %15 : vector<128x1xi32>
    %c0_4 = arith.constant 0 : index
    %c0_5 = arith.constant 0 : index
    %17 = vector.load %arg3[%c0_4, %c0_5] : memref<1x1xi32, #tpu.memory_space<vmem>>, vector<1x1xi32>
    %18 = vector.shape_cast %17 : vector<1x1xi32> to vector<1x1xi32>
    %19 = vector.broadcast %18 : vector<1x1xi32> to vector<128x1xi32>
    %20 = arith.select %16, %19, %13 : vector<128x1xi1>, vector<128x1xi32>
    %21 = arith.cmpi ne, %12, %20 : vector<128x1xi32>
    %c0_i32_6 = arith.constant 0 : i32
    %22 = vector.broadcast %c0_i32_6 : i32 to vector<128x1xi32>
    %23 = arith.cmpi ne, %12, %22 : vector<128x1xi32>
    %24 = arith.andi %21, %23 : vector<128x1xi1>
    %c-1_i32 = arith.constant -1 : i32
    %25 = vector.broadcast %c-1_i32 : i32 to vector<128x1xi32>
    %26 = arith.select %24, %12, %25 : vector<128x1xi1>, vector<128x1xi32>
    %27 = vector.shape_cast %26 : vector<128x1xi32> to vector<1x128xi32>
    %c0_7 = arith.constant 0 : index
    %c0_8 = arith.constant 0 : index
    %28 = vector.load %arg2[%c0_7, %c0_8] : memref<1x128xi32, #tpu.memory_space<vmem>>, vector<1x128xi32>
    tpu.vector_store %arg2[%c0_7, %c0_8], %27 {strides = array<i32>} : memref<1x128xi32, #tpu.memory_space<vmem>>, vector<1x128xi32>,
    %29 = vector.extract_strided_slice %12 {offsets = [127, 0], sizes = [1, 1], strides = [1, 1]} : vector<128x1xi32> to vector<1x1xi32>
    %c0_9 = arith.constant 0 : index
    %c0_10 = arith.constant 0 : index
    %30 = vector.load %arg3[%c0_9, %c0_10] : memref<1x1xi32, #tpu.memory_space<vmem>>, vector<1x1xi32>
    tpu.vector_store %arg3[%c0_9, %c0_10], %29 {strides = array<i32>} : memref<1x1xi32, #tpu.memory_space<vmem>>, vector<1x1xi32>,
    return
  }
  func.func @transform_0(%arg0: i32) -> (i32, i32) {
    %c0_i32 = arith.constant 0 : i32
    %c0_i32_0 = arith.constant 0 : i32
    return %arg0, %c0_i32 : i32, i32
  }
  func.func @transform_1(%arg0: i32) -> (i32, i32) {
    %c0_i32 = arith.constant 0 : i32
    %c0_i32_0 = arith.constant 0 : i32
    return %arg0, %c0_i32 : i32, i32
  }
}

module attributes {stable_mosaic.version = 11 : i64} {
  func.func @_ctc_greedy_kernel(%arg0: i32, %arg1: memref<8x32xf32, #tpu.memory_space<vmem>>, %arg2: memref<8x1xi32, #tpu.memory_space<vmem>>, %arg3: memref<1x1xi32, #tpu.memory_space<vmem>>) attributes {dimension_semantics = [#tpu.dimension_semantics<arbitrary>], iteration_bounds = array<i64: 1>, scalar_prefetch = 0 : i64, scratch_operands = 1 : i64, tpu.core_type = #tpu.core_type<tc>, window_params = [{transform_indices = @transform_0, window_bounds = array<i64: 8, 32>}, {transform_indices = @transform_1, window_bounds = array<i64: 8, 1>}]} {
    %c0_i32 = arith.constant 0 : i32
    %0 = arith.cmpi eq, %arg0, %c0_i32 : i32
    %1 = arith.extui %0 : i1 to i32
    %c0_i32_0 = arith.constant 0 : i32
    %2 = arith.cmpi ne, %1, %c0_i32_0 : i32
    scf.if %2 {
      %c-1_i32_11 = arith.constant -1 : i32
      %30 = vector.broadcast %c-1_i32_11 : i32 to vector<1x1xi32>
      %c0_12 = arith.constant 0 : index
      %c0_13 = arith.constant 0 : index
      %31 = vector.load %arg3[%c0_12, %c0_13] : memref<1x1xi32, #tpu.memory_space<vmem>>, vector<1x1xi32>
      tpu.vector_store %arg3[%c0_12, %c0_13], %30 {strides = array<i32>} : memref<1x1xi32, #tpu.memory_space<vmem>>, vector<1x1xi32>,
    } else {
    }
    %c0 = arith.constant 0 : index
    %c0_1 = arith.constant 0 : index
    %3 = vector.load %arg1[%c0, %c0_1] : memref<8x32xf32, #tpu.memory_space<vmem>>, vector<8x32xf32>
    %4 = tpu.iota {dimensions = array<i32: 1>} : vector<8x32xi32>
    %cst = arith.constant dense<0xFF800000> : vector<8xf32>
    %5 = vector.multi_reduction <maximumf>, %3, %cst [1] : vector<8x32xf32> to vector<8xf32>
    %6 = vector.shape_cast %5 : vector<8xf32> to vector<8x1xf32>
    %7 = vector.broadcast %6 : vector<8x1xf32> to vector<8x32xf32>
    %8 = arith.cmpf oeq, %3, %7 : vector<8x32xf32>
    %c2147483647_i32 = arith.constant 2147483647 : i32
    %9 = vector.broadcast %c2147483647_i32 : i32 to vector<8x32xi32>
    %10 = arith.select %8, %4, %9 : vector<8x32xi1>, vector<8x32xi32>
    %cst_2 = arith.constant dense<2147483647> : vector<8xi32>
    %11 = vector.multi_reduction <minsi>, %10, %cst_2 [1] : vector<8x32xi32> to vector<8xi32>
    %12 = vector.shape_cast %11 : vector<8xi32> to vector<8x1xi32>
    %c1_i32 = arith.constant 1 : i32
    %13 = tpu.dynamic_rotate %12 by %c1_i32 dim 0 : vector<8x1xi32>, i32 -> vector<8x1xi32>
    %14 = tpu.iota {dimensions = array<i32: 0>} : vector<8x1xi32>
    %c0_i32_3 = arith.constant 0 : i32
    %15 = vector.broadcast %c0_i32_3 : i32 to vector<8x1xi32>
    %16 = arith.cmpi eq, %14, %15 : vector<8x1xi32>
    %c0_4 = arith.constant 0 : index
    %c0_5 = arith.constant 0 : index
    %17 = vector.load %arg3[%c0_4, %c0_5] : memref<1x1xi32, #tpu.memory_space<vmem>>, vector<1x1xi32>
    %18 = vector.shape_cast %17 : vector<1x1xi32> to vector<1x1xi32>
    %19 = vector.broadcast %18 : vector<1x1xi32> to vector<8x1xi32>
    %20 = arith.select %16, %19, %13 : vector<8x1xi1>, vector<8x1xi32>
    %21 = arith.cmpi ne, %12, %20 : vector<8x1xi32>
    %c0_i32_6 = arith.constant 0 : i32
    %22 = vector.broadcast %c0_i32_6 : i32 to vector<8x1xi32>
    %23 = arith.cmpi ne, %12, %22 : vector<8x1xi32>
    %24 = arith.andi %21, %23 : vector<8x1xi1>
    %c-1_i32 = arith.constant -1 : i32
    %25 = vector.broadcast %c-1_i32 : i32 to vector<8x1xi32>
    %26 = arith.select %24, %12, %25 : vector<8x1xi1>, vector<8x1xi32>
    %c0_7 = arith.constant 0 : index
    %c0_8 = arith.constant 0 : index
    %27 = vector.load %arg2[%c0_7, %c0_8] : memref<8x1xi32, #tpu.memory_space<vmem>>, vector<8x1xi32>
    tpu.vector_store %arg2[%c0_7, %c0_8], %26 {strides = array<i32>} : memref<8x1xi32, #tpu.memory_space<vmem>>, vector<8x1xi32>,
    %28 = vector.extract_strided_slice %12 {offsets = [7, 0], sizes = [1, 1], strides = [1, 1]} : vector<8x1xi32> to vector<1x1xi32>
    %c0_9 = arith.constant 0 : index
    %c0_10 = arith.constant 0 : index
    %29 = vector.load %arg3[%c0_9, %c0_10] : memref<1x1xi32, #tpu.memory_space<vmem>>, vector<1x1xi32>
    tpu.vector_store %arg3[%c0_9, %c0_10], %28 {strides = array<i32>} : memref<1x1xi32, #tpu.memory_space<vmem>>, vector<1x1xi32>,
    return
  }
  func.func @transform_0(%arg0: i32) -> (i32, i32) {
    %c0_i32 = arith.constant 0 : i32
    %c0_i32_0 = arith.constant 0 : i32
    return %arg0, %c0_i32 : i32, i32
  }
  func.func @transform_1(%arg0: i32) -> (i32, i32) {
    %c0_i32 = arith.constant 0 : i32
    %c0_i32_0 = arith.constant 0 : i32
    return %arg0, %c0_i32 : i32, i32
  }
}

</mosaic_0001>

<bundles_post_ra>
// kernel: tpu_custom_call.1
= control target key start
LH: loop header
LB: loop body
LE: loop exit
PB: predicated region body
PF: predicated region fallthrough
CT: control target
= control target key end

     0   :  { %6 = vsyncpa [#allocation4], 0  ;;  %s1129_s0 = inlined_call_operand.hbm [shape: f32[8,32], index: 0, kind: input, shape index: {}]   ;;  %s1130_s1 = inlined_call_operand.hbm [shape: s32[1,128], index: 1, kind: output, shape index: {}]  }
   0x1   :  { %7 = vsyncpa [#allocation5], 0 }
   0x2   :  { %11 = vsyncadd [#allocation4], 1920  ;;  %s12_s8 = sshll.u32 %s1129_s0, 4  ;;  %s709_s9 = smov [#allocation3]   ;;  %s13_s8 = int_to_ptr.hbm [resolvable:$true] %s12_s8 }
   0x3   :  { %s14_s10 = sshll.u32 %s709_s9, 4  ;;  %s710_s11 = smov 128   ;;  %s15_s10 = int_to_ptr.vmem [resolvable:$true] %s14_s10 }
   0x4   :  { %s711_s12 = smov 8  }
   0x5   :  { %20 = dma.hbm_to_vmem [thread:$0]  %s13_s8, 128, %s15_s10, [#allocation4], %s710_s11, %s710_s11, %s711_s12  }
   0x6   :  { %705 = dma.done.wait [#allocation4], 2048  }
   0x7   :  { %706 = vsyncadd [#allocation4], 4294965248  ;;  %vm49_vm0 = vcmask 261120   ;;  %v728_v0 = vld [vmem:[#allocation3 + $0x20] sm:$0xff]  ;;  %v33_v1 = vld [vmem:[#allocation3 + $0x10] sm:$0xff]  ;;  %v47_v32 = vlaneseq  ;;  %s714_s0 = smov [#allocation6]  }
   0x8   :  { %v31_v2 = vld [vmem:[#allocation3] sm:$0xff]  ;;  %v62_v3 = vsel %vm49_vm0, %v728_v0, -inf  ;;  %v56_v4 = vsel %vm49_vm0, %v33_v1, -inf  ;;  %v734_v6 = vld [vmem:[#allocation3 + $0x28] sm:$0xff]  ;;  %v736_v7 = vld [vmem:[#allocation3 + $0x18] sm:$0xff]  ;;  %s635_s13 = sshll.u32 %s714_s0, 4  ;;  %s636_s13 = int_to_ptr.vmem [resolvable:$true] %s635_s13 }
   0x9   :  { %v50_v5 = vsel %vm49_vm0, %v31_v2, -inf  ;;  %63 = vmax.xlane.f32.xlu2 %v62_v3  ;;  %57 = vmax.xlane.f32.xlu1 %v56_v4  ;;  %v738_v8 = vld [vmem:[#allocation3 + $0x8] sm:$0xff]  ;;  %v65_v9 = vsel %vm49_vm0, %v734_v6, -inf  ;;  %v59_v10 = vsel %vm49_vm0, %v736_v7, -inf  ;;  %v746_v12 = vld [vmem:[#allocation3 + $0x40] sm:$0xff]  ;;  %v748_v13 = vld [vmem:[#allocation3 + $0x38] sm:$0xff] }
   0xa   :  { %51 = vmax.xlane.f32.xlu0 %v50_v5  ;;  %v53_v11 = vsel %vm49_vm0, %v738_v8, -inf  ;;  %v750_v14 = vld [vmem:[#allocation3 + $0x30] sm:$0xff]  ;;  %v74_v15 = vsel %vm49_vm0, %v746_v12, -inf  ;;  %v71_v16 = vsel %vm49_vm0, %v748_v13, -inf  ;;  %v758_v18 = vld [vmem:[#allocation3 + $0x58] sm:$0xff]  ;;  %v762_v20 = vld [vmem:[#allocation3 + $0x48] sm:$0xff] }
   0xb   :  { %v68_v17 = vsel %vm49_vm0, %v750_v14, -inf  ;;  %v760_v19 = vld [vmem:[#allocation3 + $0x50] sm:$0xff]  ;;  %v83_v21 = vsel %vm49_vm0, %v758_v18, -inf  ;;  %v77_v23 = vsel %vm49_vm0, %v762_v20, -inf  ;;  %v772_v25 = vld [vmem:[#allocation3 + $0x68] sm:$0xff]  ;;  %v774_v26 = vld [vmem:[#allocation3 + $0x60] sm:$0xff] }
   0xc   :  { %v80_v22 = vsel %vm49_vm0, %v760_v19, -inf  ;;  %v770_v24 = vld [vmem:[#allocation3 + $0x70] sm:$0xff]  ;;  %v89_v28 = vsel %vm49_vm0, %v772_v25, -inf  ;;  %v86_v29 = vsel %vm49_vm0, %v774_v26, -inf  ;;  %v782_v30 = vld [vmem:[#allocation3 + $0x78] sm:$0xff]  ;;  %v787_v33 = vand.u32 127, %v47_v32 }
   0xd   :  { %v92_v27 = vsel %vm49_vm0, %v770_v24, -inf  ;;  %v95_v31 = vsel %vm49_vm0, %v782_v30, -inf  ;;  %s637_s16 = sshll.u32 %s1130_s1, 4  ;;  %s638_s16 = int_to_ptr.hbm [resolvable:$true] %s637_s16 }
  0x11   :  { %66 = vmax.xlane.f32.xlu2 %v65_v9  ;;  %60 = vmax.xlane.f32.xlu1 %v59_v10 }
  0x12   :  { %54 = vmax.xlane.f32.xlu0 %v53_v11 }
  0x19   :  { %75 = vmax.xlane.f32.xlu2 %v74_v15  ;;  %72 = vmax.xlane.f32.xlu1 %v71_v16 }
  0x1a   :  { %69 = vmax.xlane.f32.xlu0 %v68_v17 }
  0x21   :  { %84 = vmax.xlane.f32.xlu2 %v83_v21  ;;  %81 = vmax.xlane.f32.xlu1 %v80_v22 }
  0x22   :  { %78 = vmax.xlane.f32.xlu0 %v77_v23 }
  0x29   :  { %93 = vmax.xlane.f32.xlu2 %v92_v27  ;;  %90 = vmax.xlane.f32.xlu1 %v89_v28 }
  0x2a   :  { %87 = vmax.xlane.f32.xlu0 %v86_v29 }
  0x32   :  { %96 = vmax.xlane.f32.xlu0 %v95_v31 }
  0x7c   :  { %v64_v34 = vpop.xlane.xlu2 %63  ;;  %v58_v35 = vpop.xlane.xlu1 %57 }
  0x7d   :  { %vm100_vm1 = vcmp.eq.f32.partialorder %v33_v1, %v58_v35  ;;  %v52_v36 = vpop.xlane.xlu0 %51  ;;  %vm102_vm3 = vcmp.eq.f32.partialorder %v728_v0, %v64_v34 }
  0x7e   :  { %v116_v37 = vsel %vm100_vm1, %v787_v33, 2147483647  ;;  %vm98_vm2 = vcmp.eq.f32.partialorder %v31_v2, %v52_v36  ;;  %v118_v53 = vsel %vm102_vm3, %v787_v33, 2147483647 }
  0x7f   :  { %v791_v38 = vsel %vm49_vm0, %v116_v37, 2147483647  ;;  %v114_v39 = vsel %vm98_vm2, %v787_v33, 2147483647  ;;  %v830_v60 = vsel %vm49_vm0, %v118_v53, 2147483647 }
  0x80   :  { %v795_v40 = vsel %vm49_vm0, %v114_v39, 2147483647  ;;  %v162_v41 = vshra.s32 %v791_v38, 16  ;;  %v192_v2 = vshra.s32 %v830_v60, 16 }
  0x81   :  { %v132_v42 = vshra.s32 %v795_v40, 16 }
  0x82   :  { %v799_v43 = vcvt.s32.f32 %v162_v41  ;;  %v857_v11 = vcvt.s32.f32 %v192_v2 }
  0x83   :  { %v801_v44 = vcvt.s32.f32 %v132_v42 }
  0x84   :  { %v67_v45 = vpop.xlane.xlu2 %66  ;;  %165 = vmin.xlane.f32.xlu2 %v799_v43  ;;  %v61_v46 = vpop.xlane.xlu1 %60 }
  0x85   :  { %vm103_vm4 = vcmp.eq.f32.partialorder %v734_v6, %v67_v45  ;;  %vm101_vm5 = vcmp.eq.f32.partialorder %v736_v7, %v61_v46  ;;  %135 = vmin.xlane.f32.xlu1 %v801_v44  ;;  %v55_v47 = vpop.xlane.xlu0 %54 }
  0x86   :  { %v119_v48 = vsel %vm103_vm4, %v787_v33, 2147483647  ;;  %v117_v49 = vsel %vm101_vm5, %v787_v33, 2147483647  ;;  %vm99_vm6 = vcmp.eq.f32.partialorder %v738_v8, %v55_v47 }
  0x87   :  { %v812_v50 = vsel %vm49_vm0, %v119_v48, 2147483647  ;;  %v815_v51 = vsel %vm49_vm0, %v117_v49, 2147483647  ;;  %v115_v52 = vsel %vm99_vm6, %v787_v33, 2147483647 }
  0x88   :  { %v820_v54 = vsel %vm49_vm0, %v115_v52, 2147483647  ;;  %v207_v55 = vshra.s32 %v812_v50, 16  ;;  %v177_v56 = vshra.s32 %v815_v51, 16 }
  0x89   :  { %v147_v57 = vshra.s32 %v820_v54, 16 }
  0x8a   :  { %v825_v58 = vcvt.s32.f32 %v207_v55  ;;  %v827_v59 = vcvt.s32.f32 %v177_v56 }
  0x8b   :  { %v832_v61 = vcvt.s32.f32 %v147_v57 }
  0x8c   :  { %v76_v62 = vpop.xlane.xlu2 %75  ;;  %210 = vmin.xlane.f32.xlu2 %v825_v58  ;;  %v73_v63 = vpop.xlane.xlu1 %72 }
  0x8d   :  { %vm106_vm7 = vcmp.eq.f32.partialorder %v746_v12, %v76_v62  ;;  %180 = vmin.xlane.f32.xlu1 %v827_v59  ;;  %150 = vmin.xlane.f32.xlu0 %v832_v61  ;;  %v70_v0 = vpop.xlane.xlu0 %69  ;;  %vm105_vm8 = vcmp.eq.f32.partialorder %v748_v13, %v73_v63 }
  0x8e   :  { %v122_v1 = vsel %vm106_vm7, %v787_v33, 2147483647  ;;  %vm104_vm9 = vcmp.eq.f32.partialorder %v750_v14, %v70_v0  ;;  %v121_v5 = vsel %vm105_vm8, %v787_v33, 2147483647  ;;  %v131_v0 = vand.u32 65535, %v795_v40 }
  0x8f   :  { %v843_v3 = vsel %vm49_vm0, %v122_v1, 2147483647  ;;  %v120_v4 = vsel %vm104_vm9, %v787_v33, 2147483647  ;;  %v855_v10 = vsel %vm49_vm0, %v121_v5, 2147483647 }
  0x90   :  { %v848_v6 = vsel %vm49_vm0, %v120_v4, 2147483647  ;;  %v252_v7 = vshra.s32 %v843_v3, 16  ;;  %v237_v15 = vshra.s32 %v855_v10, 16  ;;  %v133_v5 = vcvt.s32.f32 %v131_v0 }
  0x91   :  { %v222_v8 = vshra.s32 %v848_v6, 16  ;;  %v176_v40 = vand.u32 65535, %v815_v51 }
  0x92   :  { %v852_v9 = vcvt.s32.f32 %v252_v7  ;;  %v876_v23 = vcvt.s32.f32 %v237_v15 }
  0x93   :  { %v859_v12 = vcvt.s32.f32 %v222_v8 }
  0x94   :  { %v85_v13 = vpop.xlane.xlu2 %84  ;;  %255 = vmin.xlane.f32.xlu2 %v852_v9  ;;  %v82_v37 = vpop.xlane.xlu1 %81 }
  0x95   :  { %vm109_vm10 = vcmp.eq.f32.partialorder %v758_v18, %v85_v13  ;;  %195 = vmin.xlane.f32.xlu0 %v857_v11  ;;  %225 = vmin.xlane.f32.xlu1 %v859_v12  ;;  %v79_v14 = vpop.xlane.xlu0 %78  ;;  %vm108_vm14 = vcmp.eq.f32.partialorder %v760_v19, %v82_v37  ;;  %v146_v13 = vand.u32 65535, %v820_v54  ;;  %v221_v54 = vand.u32 65535, %v848_v6 }
  0x96   :  { %v125_v16 = vsel %vm109_vm10, %v787_v33, 2147483647  ;;  %vm107_vm11 = vcmp.eq.f32.partialorder %v762_v20, %v79_v14  ;;  %v124_v47 = vsel %vm108_vm14, %v787_v33, 2147483647 }
  0x97   :  { %v869_v17 = vsel %vm49_vm0, %v125_v16, 2147483647  ;;  %v123_v21 = vsel %vm107_vm11, %v787_v33, 2147483647  ;;  %v913_v53 = vsel %vm49_vm0, %v124_v47, 2147483647 }
  0x98   :  { %v873_v22 = vsel %vm49_vm0, %v123_v21, 2147483647  ;;  %v297_v18 = vshra.s32 %v869_v17, 16 }
  0x99   :  { %v267_v27 = vshra.s32 %v873_v22, 16  ;;  %v266_v6 = vand.u32 65535, %v873_v22  ;;  %v251_v22 = vand.u32 65535, %v843_v3  ;;  %v296_v3 = vand.u32 65535, %v869_v17 }
  0x9a   :  { %v879_v28 = vcvt.s32.f32 %v297_v18 }
  0x9b   :  { %v881_v29 = vcvt.s32.f32 %v267_v27  ;;  %v191_v27 = vand.u32 65535, %v830_v60  ;;  %v236_v60 = vand.u32 65535, %v855_v10 }
  0x9c   :  { %v94_v31 = vpop.xlane.xlu2 %93  ;;  %v91_v52 = vpop.xlane.xlu1 %90 }
  0x9d   :  { %vm112_vm12 = vcmp.eq.f32.partialorder %v770_v24, %v94_v31  ;;  %240 = vmin.xlane.f32.xlu0 %v876_v23  ;;  %300 = vmin.xlane.f32.xlu1 %v879_v28  ;;  %v88_v20 = vpop.xlane.xlu0 %87  ;;  %vm111_vm1 = vcmp.eq.f32.partialorder %v772_v25, %v91_v52  ;;  %v161_v25 = vand.u32 65535, %v791_v38  ;;  %v206_v38 = vand.u32 65535, %v812_v50 }
  0x9e   :  { %v128_v34 = vsel %vm112_vm12, %v787_v33, 2147483647  ;;  %270 = vmin.xlane.f32.xlu2 %v881_v29  ;;  %vm110_vm13 = vcmp.eq.f32.partialorder %v774_v26, %v88_v20  ;;  %v127_v55 = vsel %vm111_vm1, %v787_v33, 2147483647  ;;  %v148_v50 = vcvt.s32.f32 %v146_v13 }
  0x9f   :  { %v890_v35 = vsel %vm49_vm0, %v128_v34, 2147483647  ;;  %v126_v36 = vsel %vm110_vm13, %v787_v33, 2147483647  ;;  %v924_v57 = vsel %vm49_vm0, %v127_v55, 2147483647  ;;  %v163_v2 = vcvt.s32.f32 %v161_v25 }
  0xa0   :  { %v894_v39 = vsel %vm49_vm0, %v126_v36, 2147483647  ;;  %v342_v24 = vshra.s32 %v890_v35, 16  ;;  %v327_v62 = vshra.s32 %v924_v57, 16  ;;  %v208_v15 = vcvt.s32.f32 %v206_v38 }
  0xa1   :  { %v312_v41 = vshra.s32 %v894_v39, 16  ;;  %v193_v34 = vcvt.s32.f32 %v191_v27  ;;  %v311_v10 = vand.u32 65535, %v894_v39  ;;  %v298_v55 = vcvt.s32.f32 %v296_v3 }
  0xa2   :  { %v898_v42 = vcvt.s32.f32 %v342_v24  ;;  %v928_v63 = vcvt.s32.f32 %v327_v62  ;;  %v238_v24 = vcvt.s32.f32 %v236_v60  ;;  %v281_v25 = vand.u32 65535, %v913_v53 }
  0xa3   :  { %v900_v45 = vcvt.s32.f32 %v312_v41  ;;  %v313_v47 = vcvt.s32.f32 %v311_v10  ;;  %v341_v17 = vand.u32 65535, %v890_v35  ;;  %v1016_v27 = vshrl.u32 %v47_v32, 7 }
  0xa5   :  { %345 = vmin.xlane.f32.xlu1 %v898_v42  ;;  %v97_v26 = vpop.xlane.xlu0 %96 }
  0xa6   :  { %315 = vmin.xlane.f32.xlu2 %v900_v45  ;;  %vm113_vm15 = vcmp.eq.f32.partialorder %v782_v30, %v97_v26  ;;  %v282_v30 = vshra.s32 %v913_v53, 16  ;;  %v268_v26 = vcvt.s32.f32 %v266_v6  ;;  %v326_v53 = vand.u32 65535, %v924_v57 }
  0xa7   :  { %v129_v46 = vsel %vm113_vm15, %v787_v33, 2147483647 }
  0xa8   :  { %v909_v48 = vsel %vm49_vm0, %v129_v46, 2147483647  ;;  %v921_v56 = vcvt.s32.f32 %v282_v30 }
  0xa9   :  { %v357_v49 = vshra.s32 %v909_v48, 16  ;;  %v356_v39 = vand.u32 65535, %v909_v48 }
  0xab   :  { %v915_v19 = vcvt.s32.f32 %v357_v49  ;;  %v253_v49 = vcvt.s32.f32 %v251_v22 }
  0xad   :  { %360 = vmin.xlane.f32.xlu0 %v915_v19 }
  0xb5   :  { %285 = vmin.xlane.f32.xlu0 %v921_v56 }
  0xbd   :  { %330 = vmin.xlane.f32.xlu0 %v928_v63 }
  0xf7   :  { %v933_v1 = vpop.xlane.xlu2 %165 }
  0xf8   :  { %v935_v4 = vpop.xlane.xlu1 %135  ;;  %vm167_vm0 = vcmp.eq.f32.partialorder %v799_v43, %v933_v1  ;;  %v178_v43 = vcvt.s32.f32 %v176_v40  ;;  %v172_v40 = vcvt.f32.s32 %v933_v1 }
  0xf9   :  { %vm137_vm2 = vcmp.eq.f32.partialorder %v801_v44, %v935_v4  ;;  %v168_v7 = vsel %vm167_vm0, %v163_v2, inf  ;;  %v343_v2 = vcvt.s32.f32 %v341_v17  ;;  %v142_v13 = vcvt.f32.s32 %v935_v4 }
  0xfa   :  { %v138_v8 = vsel %vm137_vm2, %v133_v5, inf  ;;  %169 = vmin.xlane.f32.xlu0 %v168_v7  ;;  %vm29_vm0 = vcmask 0   ;;  %vm388_vm2 = vcmp.lt.s32.totalorder %v1016_v27, 1 }
  0xfb   :  { %139 = vmin.xlane.f32.xlu2 %v138_v8  ;;  %v328_v8 = vcvt.s32.f32 %v326_v53 }
  0xff   :  { %v944_v14 = vpop.xlane.xlu2 %210 }
 0x100   :  { %v946_v16 = vpop.xlane.xlu1 %180  ;;  %v948_v21 = vpop.xlane.xlu0 %150  ;;  %vm212_vm3 = vcmp.eq.f32.partialorder %v825_v58, %v944_v14  ;;  %v217_v1 = vcvt.f32.s32 %v944_v14 }
 0x101   :  { %vm182_vm4 = vcmp.eq.f32.partialorder %v827_v59, %v946_v16  ;;  %v213_v44 = vsel %vm212_vm3, %v208_v15, inf  ;;  %vm152_vm5 = vcmp.eq.f32.partialorder %v832_v61, %v948_v21  ;;  %v223_v59 = vcvt.s32.f32 %v221_v54 }
 0x102   :  { %v183_v18 = vsel %vm182_vm4, %v178_v43, inf  ;;  %214 = vmin.xlane.f32.xlu0 %v213_v44  ;;  %v153_v51 = vsel %vm152_vm5, %v148_v50, inf  ;;  %v187_v57 = vcvt.f32.s32 %v946_v16  ;;  %v157_v43 = vcvt.f32.s32 %v948_v21 }
 0x103   :  { %184 = vmin.xlane.f32.xlu2 %v183_v18  ;;  %154 = vmin.xlane.f32.xlu1 %v153_v51  ;;  %v713_v50 = vmov 4294967295   ;;  %v143_v18 = vshll.u32 %v142_v13, 16 }
 0x104   :  { %30 = vst.msk [vmem:[#allocation2] sm:$0x1] %vm29_vm0, %v713_v50 }
 0x107   :  { %v958_v31 = vpop.xlane.xlu2 %255 }
 0x108   :  { %v960_v58 = vpop.xlane.xlu1 %225  ;;  %v962_v20 = vpop.xlane.xlu0 %195  ;;  %vm257_vm10 = vcmp.eq.f32.partialorder %v852_v9, %v958_v31  ;;  %v358_v9 = vcvt.s32.f32 %v356_v39 }
 0x109   :  { %vm227_vm6 = vcmp.eq.f32.partialorder %v859_v12, %v960_v58  ;;  %vm197_vm7 = vcmp.eq.f32.partialorder %v857_v11, %v962_v20  ;;  %v258_v52 = vsel %vm257_vm10, %v253_v49, inf  ;;  %v232_v60 = vcvt.f32.s32 %v960_v58 }
 0x10a   :  { %v228_v61 = vsel %vm227_vm6, %v223_v59, inf  ;;  %v198_v36 = vsel %vm197_vm7, %v193_v34, inf  ;;  %v188_v59 = vshll.u32 %v187_v57, 16  ;;  %v202_v14 = vcvt.f32.s32 %v962_v20 }
 0x10b   :  { %229 = vmin.xlane.f32.xlu2 %v228_v61  ;;  %199 = vmin.xlane.f32.xlu1 %v198_v36  ;;  %v158_v61 = vshll.u32 %v157_v43, 16 }
 0x110   :  { %v970_v37 = vpop.xlane.xlu0 %240 }
 0x111   :  { %v972_v41 = vpop.xlane.xlu2 %270  ;;  %vm242_vm8 = vcmp.eq.f32.partialorder %v876_v23, %v970_v37  ;;  %v986_v23 = vpop.xlane.xlu1 %300  ;;  %v247_v53 = vcvt.f32.s32 %v970_v37 }
 0x112   :  { %vm272_vm9 = vcmp.eq.f32.partialorder %v881_v29, %v972_v41  ;;  %v243_v11 = vsel %vm242_vm8, %v238_v24, inf  ;;  %vm302_vm12 = vcmp.eq.f32.partialorder %v879_v28, %v986_v23  ;;  %v283_v28 = vcvt.s32.f32 %v281_v25 }
 0x113   :  { %v273_v12 = vsel %vm272_vm9, %v268_v26, inf  ;;  %244 = vmin.xlane.f32.xlu1 %v243_v11  ;;  %v303_v62 = vsel %vm302_vm12, %v298_v55, inf  ;;  %v218_v11 = vshll.u32 %v217_v1, 16  ;;  %v203_v55 = vshll.u32 %v202_v14, 16 }
 0x114   :  { %274 = vmin.xlane.f32.xlu2 %v273_v12  ;;  %v248_v13 = vshll.u32 %v247_v53, 16 }
 0x119   :  { %v982_v46 = vpop.xlane.xlu2 %315  ;;  %v997_v0 = vpop.xlane.xlu1 %345 }
 0x11a   :  { %vm317_vm11 = vcmp.eq.f32.partialorder %v900_v45, %v982_v46  ;;  %vm347_vm14 = vcmp.eq.f32.partialorder %v898_v42, %v997_v0  ;;  %v712_v42 = vmov 0  }
 0x11b   :  { %v318_v29 = vsel %vm317_vm11, %v313_v47, inf  ;;  %259 = vmin.xlane.f32.xlu1 %v258_v52  ;;  %v348_v5 = vsel %vm347_vm14, %v343_v2, inf  ;;  %654 = vset.pattern.permute.xlu2 %v712_v42  ;;  %v233_v47 = vshll.u32 %v232_v60, 16 }
 0x11c   :  { %319 = vmin.xlane.f32.xlu2 %v318_v29  ;;  %653 = vset.pattern.permute.xlu1 %v712_v42 }
 0x11d   :  { %655 = vset.pattern.permute.xlu0 %v712_v42 }
 0x120   :  { %v990_v30 = vpop.xlane.xlu0 %360 }
 0x121   :  { %vm362_vm13 = vcmp.eq.f32.partialorder %v915_v19, %v990_v30 }
 0x122   :  { %v363_v45 = vsel %vm362_vm13, %v358_v9, inf }
 0x123   :  { %304 = vmin.xlane.f32.xlu1 %v303_v62 }
 0x124   :  { %364 = vmin.xlane.f32.xlu2 %v363_v45 }
 0x128   :  { %v1000_v48 = vpop.xlane.xlu0 %285 }
 0x129   :  { %vm287_vm15 = vcmp.eq.f32.partialorder %v921_v56, %v1000_v48 }
 0x12a   :  { %v288_v19 = vsel %vm287_vm15, %v283_v28, inf }
 0x12b   :  { %289 = vmin.xlane.f32.xlu0 %v288_v19  ;;  %349 = vmin.xlane.f32.xlu1 %v348_v5 }
 0x130   :  { %v1007_v7 = vpop.xlane.xlu0 %330 }
 0x131   :  { %vm332_vm1 = vcmp.eq.f32.partialorder %v928_v63, %v1007_v7  ;;  %v173_v63 = vshll.u32 %v172_v40, 16  ;;  %v337_v37 = vcvt.f32.s32 %v1007_v7 }
 0x132   :  { %v333_v35 = vsel %vm332_vm1, %v328_v8, inf }
 0x133   :  { %334 = vmin.xlane.f32.xlu0 %v333_v35 }
 0x16d   :  { %v170_v38 = vpop.xlane.xlu0 %169 }
 0x16e   :  { %v140_v56 = vpop.xlane.xlu2 %139  ;;  %v171_v15 = vcvt.f32.s32 %v170_v38 }
 0x16f   :  { %v141_v44 = vcvt.f32.s32 %v140_v56 }
 0x170   :  { %v174_v4 = vadd.s32 %v173_v63, %v171_v15  ;;  %v277_v63 = vcvt.f32.s32 %v972_v41 }
 0x171   :  { %v1019_v36 = vadd.s32 %v143_v18, %v141_v44 }
 0x172   :  { %v372_v32 = vrot.slane %v174_v4, 7  ;;  %vm472_vm10 = vcmp.ne.s32.totalorder %v174_v4, 0 }
 0x173   :  { %v370_v10 = vrot.slane %v1019_v36, 7 }
 0x175   :  { %v215_v54 = vpop.xlane.xlu0 %214 }
 0x176   :  { %v185_v51 = vpop.xlane.xlu2 %184  ;;  %v155_v16 = vpop.xlane.xlu1 %154  ;;  %v216_v24 = vcvt.f32.s32 %v215_v54 }
 0x177   :  { %v186_v34 = vcvt.f32.s32 %v185_v51  ;;  %v156_v21 = vcvt.f32.s32 %v155_v16  ;;  %v262_v51 = vcvt.f32.s32 %v958_v31  ;;  %v322_v31 = vcvt.f32.s32 %v982_v46 }
 0x178   :  { %v1025_v49 = vadd.s32 %v218_v11, %v216_v24 }
 0x179   :  { %v189_v6 = vadd.s32 %v188_v59, %v186_v34  ;;  %v159_v26 = vadd.s32 %v158_v61, %v156_v21  ;;  %v278_v59 = vshll.u32 %v277_v63, 16  ;;  %v263_v41 = vshll.u32 %v262_v51, 16 }
 0x17a   :  { %v375_v5 = vrot.slane %v1025_v49, 7 }
 0x17b   :  { %v373_v12 = vrot.slane %v189_v6, 7  ;;  %v371_v22 = vrot.slane %v159_v26, 7  ;;  %vm473_vm4 = vcmp.ne.s32.totalorder %v189_v6, 0  ;;  %vm471_vm6 = vcmp.ne.s32.totalorder %v159_v26, 0 }
 0x17d   :  { %v401_v29 = vsel %vm388_vm2, %v372_v32, %v373_v12  ;;  %v403_v52 = vsel %vm388_vm2, %v370_v10, %v371_v22  ;;  %v402_v39 = vsel %vm388_vm2, %v371_v22, %v372_v32  ;;  %v323_v22 = vshll.u32 %v322_v31, 16 }
 0x17e   :  { %v230_v58 = vpop.xlane.xlu2 %229  ;;  %vm457_vm3 = vcmp.ne.s32.totalorder %v189_v6, %v401_v29  ;;  %v200_v3 = vpop.xlane.xlu1 %199  ;;  %vm455_vm5 = vcmp.ne.s32.totalorder %v159_v26, %v403_v52  ;;  %vm456_vm7 = vcmp.ne.s32.totalorder %v174_v4, %v402_v39 }
 0x17f   :  { %v231_v20 = vcvt.f32.s32 %v230_v58  ;;  %vm1035_vm8 = vmand %vm457_vm3, %vm473_vm4  ;;  %v201_v45 = vcvt.f32.s32 %v200_v3  ;;  %vm475_vm4 = vcmp.ne.s32.totalorder %v1025_v49, 0  ;;  %v292_v3 = vcvt.f32.s32 %v1000_v48 }
 0x180   :  { %vm487_vm9 = vmand %vm455_vm5, %vm471_vm6  ;;  %v505_v62 = vsel %vm1035_vm8, %v189_v6, 4294967295  ;;  %v307_v6 = vcvt.f32.s32 %v986_v23 }
 0x181   :  { %v234_v25 = vadd.s32 %v233_v47, %v231_v20  ;;  %v503_v17 = vsel %vm487_vm9, %v159_v26, 4294967295  ;;  %vm488_vm11 = vmand %vm456_vm7, %vm472_vm10  ;;  %v204_v28 = vadd.s32 %v203_v55, %v201_v45  ;;  %v367_v26 = vcvt.f32.s32 %v990_v30  ;;  %v656_v20 = vld [vmem:[#allocation2] ss:$0 sm:$0xff] }
 0x182   :  { %522 = vperm.xlu1 %653, %v503_v17   ;;  %v504_v2 = vsel %vm488_vm11, %v174_v4, 4294967295  ;;  %v308_v14 = vshll.u32 %v307_v6, 16 }
 0x183   :  { %525 = vperm.xlu2 %654, %v504_v2   ;;  %v376_v19 = vrot.slane %v234_v25, 7  ;;  %v374_v8 = vrot.slane %v204_v28, 7  ;;  %vm476_vm13 = vcmp.ne.s32.totalorder %v234_v25, 0  ;;  %vm474_vm15 = vcmp.ne.s32.totalorder %v204_v28, 0 }
 0x184   :  { %v293_v2 = vshll.u32 %v292_v3, 16  ;;  %v599_v3 = vadd.s32 4294967224, %v787_v33 }
 0x185   :  { %v398_v35 = vsel %vm388_vm2, %v375_v5, %v376_v19  ;;  %v400_v42 = vsel %vm388_vm2, %v373_v12, %v374_v8  ;;  %v399_v38 = vsel %vm388_vm2, %v374_v8, %v375_v5 }
 0x186   :  { %vm460_vm12 = vcmp.ne.s32.totalorder %v234_v25, %v398_v35  ;;  %v245_v40 = vpop.xlane.xlu1 %244  ;;  %vm458_vm14 = vcmp.ne.s32.totalorder %v204_v28, %v400_v42  ;;  %vm459_vm1 = vcmp.ne.s32.totalorder %v1025_v49, %v399_v38 }
 0x187   :  { %v275_v56 = vpop.xlane.xlu2 %274  ;;  %vm1050_vm0 = vmand %vm460_vm12, %vm476_vm13  ;;  %v246_v57 = vcvt.f32.s32 %v245_v40 }
 0x188   :  { %vm490_vm3 = vmand %vm458_vm14, %vm474_vm15  ;;  %v508_v15 = vsel %vm1050_vm0, %v234_v25, 4294967295  ;;  %v276_v54 = vcvt.f32.s32 %v275_v56  ;;  %vm628_vm15 = vcmask 7175  }
 0x189   :  { %v506_v43 = vsel %vm490_vm3, %v204_v28, 4294967295  ;;  %vm1057_vm5 = vmand %vm459_vm1, %vm475_vm4  ;;  %v249_v50 = vadd.s32 %v248_v13, %v246_v57  ;;  %vm420_vm1 = vcmp.eq.s32.totalorder %v1016_v27, 0  ;;  %v567_v27 = vadd.s32 4294967288, %v787_v33 }
 0x18a   :  { %531 = vperm.xlu1 %653, %v506_v43   ;;  %v507_v18 = vsel %vm1057_vm5, %v1025_v49, 4294967295  ;;  %v1068_v61 = vadd.s32 %v278_v59, %v276_v54  ;;  %v368_v49 = vshll.u32 %v367_v26, 16 }
 0x18b   :  { %528 = vperm.xlu2 %654, %v505_v62   ;;  %v377_v1 = vrot.slane %v249_v50, 7  ;;  %vm477_vm7 = vcmp.ne.s32.totalorder %v249_v50, 0  ;;  %v352_v62 = vcvt.f32.s32 %v997_v0 }
 0x18c   :  { %v379_v12 = vrot.slane %v1068_v61, 7  ;;  %vm479_vm13 = vcmp.ne.s32.totalorder %v1068_v61, 0 }
 0x18d   :  { %v397_v4 = vsel %vm388_vm2, %v376_v19, %v377_v1  ;;  %v353_v35 = vshll.u32 %v352_v62, 16 }
 0x18e   :  { %v260_v16 = vpop.xlane.xlu1 %259  ;;  %vm461_vm6 = vcmp.ne.s32.totalorder %v249_v50, %v397_v4 }
 0x18f   :  { %v320_v34 = vpop.xlane.xlu2 %319  ;;  %v261_v21 = vcvt.f32.s32 %v260_v16  ;;  %vm493_vm8 = vmand %vm461_vm6, %vm477_vm7  ;;  %vm470_vm6 = vcmp.ne.s32.totalorder %v1019_v36, 0 }
 0x190   :  { %v509_v60 = vsel %vm493_vm8, %v249_v50, 4294967295  ;;  %v321_v11 = vcvt.f32.s32 %v320_v34 }
 0x191   :  { %v264_v24 = vadd.s32 %v263_v41, %v261_v21  ;;  %540 = vperm.xlu0 %655, %v509_v60  }
 0x192   :  { %537 = vperm.xlu1 %653, %v508_v15   ;;  %v1079_v30 = vadd.s32 %v323_v22, %v321_v11 }
 0x193   :  { %534 = vperm.xlu2 %654, %v507_v18   ;;  %v378_v32 = vrot.slane %v264_v24, 7  ;;  %vm478_vm10 = vcmp.ne.s32.totalorder %v264_v24, 0 }
 0x194   :  { %v382_v17 = vrot.slane %v1079_v30, 7  ;;  %vm482_vm3 = vcmp.ne.s32.totalorder %v1079_v30, 0 }
 0x195   :  { %v396_v47 = vsel %vm388_vm2, %v377_v1, %v378_v32  ;;  %v395_v23 = vsel %vm388_vm2, %v378_v32, %v379_v12  ;;  %v571_v32 = vadd.s32 4294967280, %v787_v33 }
 0x196   :  { %v305_v46 = vpop.xlane.xlu1 %304  ;;  %vm462_vm9 = vcmp.ne.s32.totalorder %v264_v24, %v396_v47  ;;  %vm463_vm11 = vcmp.ne.s32.totalorder %v1068_v61, %v395_v23  ;;  %v583_v47 = vadd.s32 4294967256, %v787_v33 }
 0x197   :  { %v365_v29 = vpop.xlane.xlu2 %364  ;;  %v306_v58 = vcvt.f32.s32 %v305_v46  ;;  %vm494_vm12 = vmand %vm462_vm9, %vm478_vm10 }
 0x198   :  { %v366_v52 = vcvt.f32.s32 %v365_v29  ;;  %v510_v39 = vsel %vm494_vm12, %v264_v24, 4294967295  ;;  %vm495_vm14 = vmand %vm463_vm11, %vm479_vm13  ;;  %v595_v29 = vadd.s32 4294967232, %v787_v33 }
 0x199   :  { %v309_v9 = vadd.s32 %v308_v14, %v306_v58  ;;  %v511_v45 = vsel %vm495_vm14, %v1068_v61, 4294967295  ;;  %v579_v14 = vadd.s32 4294967264, %v787_v33 }
 0x19a   :  { %v369_v55 = vadd.s32 %v368_v49, %v366_v52  ;;  %546 = vperm.xlu1 %653, %v511_v45   ;;  %v591_v52 = vadd.s32 4294967240, %v787_v33 }
 0x19b   :  { %543 = vperm.xlu2 %654, %v510_v39   ;;  %v381_v25 = vrot.slane %v309_v9, 7  ;;  %vm481_vm9 = vcmp.ne.s32.totalorder %v309_v9, 0 }
 0x19c   :  { %v385_v28 = vrot.slane %v369_v55, 7  ;;  %629 = vst.msk [vmem:[#allocation2 - $0x7] sm:$0x80] %vm628_vm15, %v369_v55  ;;  %vm485_vm12 = vcmp.ne.s32.totalorder %v369_v55, 0 }
 0x19d   :  { %v392_v48 = vsel %vm388_vm2, %v381_v25, %v382_v17 }
 0x19e   :  { %v290_v19 = vpop.xlane.xlu0 %289  ;;  %v404_v5 = vsel %vm388_vm2, %v385_v28, %v370_v10  ;;  %v350_v0 = vpop.xlane.xlu1 %349  ;;  %vm466_vm0 = vcmp.ne.s32.totalorder %v1079_v30, %v392_v48 }
 0x19f   :  { %v291_v53 = vcvt.f32.s32 %v290_v19  ;;  %v438_v8 = vsel %vm420_vm1, %v656_v20, %v404_v5  ;;  %v351_v42 = vcvt.f32.s32 %v350_v0  ;;  %vm498_vm4 = vmand %vm466_vm0, %vm482_vm3  ;;  %v607_v0 = vadd.s32 4294967208, %v787_v33 }
 0x1a0   :  { %vm454_vm5 = vcmp.ne.s32.totalorder %v1019_v36, %v438_v8  ;;  %v514_v56 = vsel %vm498_vm4, %v1079_v30, 4294967295  ;;  %v587_v30 = vadd.s32 4294967248, %v787_v33 }
 0x1a1   :  { %v294_v38 = vadd.s32 %v293_v2, %v291_v53  ;;  %vm486_vm7 = vmand %vm454_vm5, %vm470_vm6  ;;  %v354_v40 = vadd.s32 %v353_v35, %v351_v42 }
 0x1a2   :  { %v502_v10 = vsel %vm486_vm7, %v1019_v36, 4294967295  ;;  %555 = vperm.xlu1 %653, %v514_v56   ;;  %v338_v36 = vshll.u32 %v337_v37, 16 }
 0x1a3   :  { %519 = vperm.xlu0 %655, %v502_v10   ;;  %v380_v13 = vrot.slane %v294_v38, 7  ;;  %v384_v57 = vrot.slane %v354_v40, 7  ;;  %vm480_vm15 = vcmp.ne.s32.totalorder %v294_v38, 0  ;;  %vm484_vm3 = vcmp.ne.s32.totalorder %v354_v40, 0 }
 0x1a4   :  { %v611_v10 = vadd.s32 4294967200, %v787_v33 }
 0x1a5   :  { %v393_v15 = vsel %vm388_vm2, %v380_v13, %v381_v25  ;;  %v394_v43 = vsel %vm388_vm2, %v379_v12, %v380_v13  ;;  %v389_v63 = vsel %vm388_vm2, %v384_v57, %v385_v28  ;;  %v575_v12 = vadd.s32 4294967272, %v787_v33 }
 0x1a6   :  { %v335_v44 = vpop.xlane.xlu0 %334  ;;  %vm465_vm8 = vcmp.ne.s32.totalorder %v309_v9, %v393_v15  ;;  %vm464_vm10 = vcmp.ne.s32.totalorder %v294_v38, %v394_v43  ;;  %vm469_vm11 = vcmp.ne.s32.totalorder %v369_v55, %v389_v63  ;;  %v603_v25 = vadd.s32 4294967216, %v787_v33 }
 0x1a7   :  { %v336_v50 = vcvt.f32.s32 %v335_v44  ;;  %vm497_vm13 = vmand %vm465_vm8, %vm481_vm9  ;;  %vm573_vm8 = vcmask 195712   ;;  %vm577_vm9 = vcmask 261312   ;;  %v619_v15 = vadd.s32 4294967184, %v787_v33 }
 0x1a8   :  { %vm501_vm14 = vmand %vm469_vm11, %vm485_vm12  ;;  %v513_v7 = vsel %vm497_vm13, %v309_v9, 4294967295  ;;  %vm585_vm11 = vcmask 392512   ;;  %vm589_vm12 = vcmask 458112   ;;  %vm593_vm13 = vcmask 523712  }
 0x1a9   :  { %v339_v18 = vadd.s32 %v338_v36, %v336_v50  ;;  %v517_v51 = vsel %vm501_vm14, %v369_v55, 4294967295  ;;  %552 = vperm.xlu2 %654, %v513_v7   ;;  %vm496_vm1 = vmand %vm464_vm10, %vm480_vm15  ;;  %vm581_vm10 = vcmask 326912   ;;  %vm597_vm14 = vcmask 589312  }
 0x1aa   :  { %v512_v54 = vsel %vm496_vm1, %v294_v38, 4294967295  ;;  %564 = vperm.xlu1 %653, %v517_v51   ;;  %vm601_vm15 = vcmask 654912   ;;  %vm605_vm1 = vcmask 720512   ;;  %v623_v44 = vadd.s32 4294967176, %v787_v33 }
 0x1ab   :  { %549 = vperm.xlu0 %655, %v512_v54   ;;  %v383_v1 = vrot.slane %v339_v18, 7  ;;  %vm483_vm6 = vcmp.ne.s32.totalorder %v339_v18, 0 }
 0x1ad   :  { %v390_v59 = vsel %vm388_vm2, %v383_v1, %v384_v57  ;;  %v391_v4 = vsel %vm388_vm2, %v382_v17, %v383_v1  ;;  %vm569_vm2 = vcmask 130112   ;;  %v615_v57 = vadd.s32 4294967192, %v787_v33 }
 0x1ae   :  { %vm468_vm0 = vcmp.ne.s32.totalorder %v354_v40, %v390_v59  ;;  %vm467_vm4 = vcmp.ne.s32.totalorder %v339_v18, %v391_v4 }
 0x1af   :  { %vm500_vm5 = vmand %vm468_vm0, %vm484_vm3  ;;  %vm609_vm0 = vcmask 786112   ;;  %vm613_vm3 = vcmask 851712  }
 0x1b0   :  { %v516_v34 = vsel %vm500_vm5, %v354_v40, 4294967295  ;;  %vm499_vm7 = vmand %vm467_vm4, %vm483_vm6  ;;  %vm617_vm4 = vcmask 917312   ;;  %vm621_vm5 = vcmask 982912   ;;  %vm625_vm6 = vcmask 1048512  }
 0x1b1   :  { %561 = vperm.xlu2 %654, %v516_v34   ;;  %v515_v16 = vsel %vm499_vm7, %v339_v18, 4294967295 }
 0x1b3   :  { %558 = vperm.xlu0 %655, %v515_v16  }
 0x1dd   :  { %v526_v41 = vpop.permute.xlu2 %525 }
 0x1de   :  { %v572_v46 = vperm.slane %v526_v41, %v571_v32 }
 0x1e5   :  { %v529_v60 = vpop.permute.xlu2 %528 }
 0x1e6   :  { %v576_v58 = vperm.slane %v529_v60, %v575_v12 }
 0x1ed   :  { %v535_v31 = vpop.permute.xlu2 %534 }
 0x1ee   :  { %v584_v55 = vperm.slane %v535_v31, %v583_v47 }
 0x1f4   :  { %v523_v61 = vpop.permute.xlu1 %522 }
 0x1f5   :  { %v544_v11 = vpop.permute.xlu2 %543  ;;  %v568_v23 = vperm.slane %v523_v61, %v567_v27 }
 0x1f6   :  { %v596_v5 = vperm.slane %v544_v11, %v595_v29 }
 0x1fc   :  { %v532_v21 = vpop.permute.xlu1 %531 }
 0x1fd   :  { %v580_v20 = vperm.slane %v532_v21, %v579_v14 }
 0x203   :  { %v541_v24 = vpop.permute.xlu0 %540  ;;  %v553_v45 = vpop.permute.xlu2 %552 }
 0x204   :  { %v538_v6 = vpop.permute.xlu1 %537  ;;  %v592_v19 = vperm.slane %v541_v24, %v591_v52  ;;  %v608_v13 = vperm.slane %v553_v45, %v607_v0 }
 0x205   :  { %v588_v17 = vperm.slane %v538_v6, %v587_v30 }
 0x20b   :  { %v562_v43 = vpop.permute.xlu2 %561 }
 0x20c   :  { %v547_v26 = vpop.permute.xlu1 %546  ;;  %v620_v51 = vperm.slane %v562_v43, %v619_v15 }
 0x20d   :  { %v600_v35 = vperm.slane %v547_v26, %v599_v3 }
 0x214   :  { %v556_v28 = vpop.permute.xlu1 %555 }
 0x215   :  { %v520_v22 = vpop.permute.xlu0 %519  ;;  %v612_v36 = vperm.slane %v556_v28, %v611_v10 }
 0x216   :  { %v566_v49 = vperm.slane %v520_v22, %v787_v33 }
 0x218   :  { %v570_v39 = vsel %vm569_vm2, %v568_v23, %v566_v49 }
 0x219   :  { %v574_v9 = vsel %vm573_vm8, %v572_v46, %v570_v39 }
 0x21a   :  { %v578_v62 = vsel %vm577_vm9, %v576_v58, %v574_v9 }
 0x21b   :  { %v582_v2 = vsel %vm581_vm10, %v580_v20, %v578_v62 }
 0x21c   :  { %v586_v48 = vsel %vm585_vm11, %v584_v55, %v582_v2  ;;  %v565_v50 = vpop.permute.xlu1 %564 }
 0x21d   :  { %v590_v53 = vsel %vm589_vm12, %v588_v17, %v586_v48  ;;  %v550_v8 = vpop.permute.xlu0 %549  ;;  %v624_v1 = vperm.slane %v565_v50, %v623_v44 }
 0x21e   :  { %v594_v42 = vsel %vm593_vm13, %v592_v19, %v590_v53  ;;  %v604_v38 = vperm.slane %v550_v8, %v603_v25 }
 0x21f   :  { %v598_v56 = vsel %vm597_vm14, %v596_v5, %v594_v42 }
 0x220   :  { %v602_v40 = vsel %vm601_vm15, %v600_v35, %v598_v56 }
 0x221   :  { %v606_v37 = vsel %vm605_vm1, %v604_v38, %v602_v40 }
 0x222   :  { %v610_v63 = vsel %vm609_vm0, %v608_v13, %v606_v37 }
 0x223   :  { %v614_v54 = vsel %vm613_vm3, %v612_v36, %v610_v63 }
 0x225   :  { %v559_v7 = vpop.permute.xlu0 %558 }
 0x226   :  { %v616_v18 = vperm.slane %v559_v7, %v615_v57 }
 0x228   :  { %v618_v59 = vsel %vm617_vm4, %v616_v18, %v614_v54 }
 0x229   :  { %v622_v33 = vsel %vm621_vm5, %v620_v51, %v618_v59 }
 0x22a   :  { %v626_v4 = vsel %vm625_vm6, %v624_v1, %v622_v33 }
 0x22b   :  { %627 = vst [vmem:[#allocation6] sm:$0x1] %v626_v4 }
 0x22c   :  { %640 = dma.vmem_to_hbm [thread:$0]  %s636_s13, 16, %s638_s16, [#allocation5]  }
 0x22d   :  { %707 = dma.done.wait [#allocation5], 16  }
 0x22e   :  { %708 = vsyncadd [#allocation5], 4294967280 }
 0x22f   :  { %645 = vsyncpa [#allocation4], 1 }
 0x230   :  { %646 = vsyncpa [#allocation5], 1 }

// kernel: tpu_custom_call.1
= control target key start
LH: loop header
LB: loop body
LE: loop exit
PB: predicated region body
PF: predicated region fallthrough
CT: control target
= control target key end

     0   :  { %vm33_vm0 = vcmask 261120   ;;  %s1125_s0 = inlined_call_operand.vmem [shape: f32[128,32], index: 0, kind: input, shape index: {}]   ;;  %s1126_s1 = inlined_call_operand.hbm [shape: s32[1,128], index: 1, kind: output, shape index: {}]  }
   0x1   :  { %v679_v0 = vld [vmem:[%s1125_s0 + $0x20] sm:$0xff]  ;;  %v17_v1 = vld [vmem:[%s1125_s0 + $0x10] sm:$0xff]  ;;  %v694_v6 = vld [vmem:[%s1125_s0 + $0x28] sm:$0xff] }
   0x2   :  { %v15_v2 = vld [vmem:[%s1125_s0] sm:$0xff]  ;;  %v46_v3 = vsel %vm33_vm0, %v679_v0, -inf  ;;  %v40_v4 = vsel %vm33_vm0, %v17_v1, -inf  ;;  %v699_v7 = vld [vmem:[%s1125_s0 + $0x18] sm:$0xff]  ;;  %v704_v8 = vld [vmem:[%s1125_s0 + $0x8] sm:$0xff] }
   0x3   :  { %v34_v5 = vsel %vm33_vm0, %v15_v2, -inf  ;;  %47 = vmax.xlane.f32.xlu2 %v46_v3  ;;  %41 = vmax.xlane.f32.xlu1 %v40_v4 }
   0x4   :  { %35 = vmax.xlane.f32.xlu0 %v34_v5 }
   0x5   :  { %6 = vsyncpa [#allocation4], 0  ;;  %v49_v9 = vsel %vm33_vm0, %v694_v6, -inf  ;;  %v43_v10 = vsel %vm33_vm0, %v699_v7, -inf  ;;  %v37_v11 = vsel %vm33_vm0, %v704_v8, -inf  ;;  %v715_v12 = vld [vmem:[%s1125_s0 + $0x40] sm:$0xff]  ;;  %v31_v32 = vlaneseq }
   0x6   :  { %v720_v13 = vld [vmem:[%s1125_s0 + $0x38] sm:$0xff]  ;;  %v725_v14 = vld [vmem:[%s1125_s0 + $0x30] sm:$0xff]  ;;  %v58_v15 = vsel %vm33_vm0, %v715_v12, -inf  ;;  %v746_v20 = vld [vmem:[%s1125_s0 + $0x48] sm:$0xff]  ;;  %s621_s12 = sshll.u32 %s1126_s1, 4  ;;  %s622_s12 = int_to_ptr.hbm [resolvable:$true] %s621_s12 }
   0x7   :  { %v55_v16 = vsel %vm33_vm0, %v720_v13, -inf  ;;  %v52_v17 = vsel %vm33_vm0, %v725_v14, -inf  ;;  %v736_v18 = vld [vmem:[%s1125_s0 + $0x58] sm:$0xff]  ;;  %v741_v19 = vld [vmem:[%s1125_s0 + $0x50] sm:$0xff]  ;;  %v61_v23 = vsel %vm33_vm0, %v746_v20, -inf  ;;  %v762_v25 = vld [vmem:[%s1125_s0 + $0x68] sm:$0xff] }
   0x8   :  { %v67_v21 = vsel %vm33_vm0, %v736_v18, -inf  ;;  %v64_v22 = vsel %vm33_vm0, %v741_v19, -inf  ;;  %v757_v24 = vld [vmem:[%s1125_s0 + $0x70] sm:$0xff]  ;;  %v767_v26 = vld [vmem:[%s1125_s0 + $0x60] sm:$0xff]  ;;  %v73_v28 = vsel %vm33_vm0, %v762_v25, -inf  ;;  %v778_v30 = vld [vmem:[%s1125_s0 + $0x78] sm:$0xff] }
   0x9   :  { %v76_v27 = vsel %vm33_vm0, %v757_v24, -inf  ;;  %v70_v29 = vsel %vm33_vm0, %v767_v26, -inf  ;;  %v79_v31 = vsel %vm33_vm0, %v778_v30, -inf  ;;  %v783_v33 = vand.u32 127, %v31_v32  ;;  %s665_s0 = smov [#allocation3]  }
   0xa   :  { %s619_s9 = sshll.u32 %s665_s0, 4  ;;  %s620_s9 = int_to_ptr.vmem [resolvable:$true] %s619_s9 }
   0xb   :  { %50 = vmax.xlane.f32.xlu2 %v49_v9  ;;  %44 = vmax.xlane.f32.xlu1 %v43_v10 }
   0xc   :  { %38 = vmax.xlane.f32.xlu0 %v37_v11 }
  0x13   :  { %59 = vmax.xlane.f32.xlu2 %v58_v15  ;;  %56 = vmax.xlane.f32.xlu1 %v55_v16 }
  0x14   :  { %53 = vmax.xlane.f32.xlu0 %v52_v17 }
  0x1b   :  { %68 = vmax.xlane.f32.xlu2 %v67_v21  ;;  %65 = vmax.xlane.f32.xlu1 %v64_v22 }
  0x1c   :  { %62 = vmax.xlane.f32.xlu0 %v61_v23 }
  0x23   :  { %77 = vmax.xlane.f32.xlu2 %v76_v27  ;;  %74 = vmax.xlane.f32.xlu1 %v73_v28 }
  0x24   :  { %71 = vmax.xlane.f32.xlu0 %v70_v29 }
  0x2c   :  { %80 = vmax.xlane.f32.xlu0 %v79_v31 }
  0x76   :  { %v48_v34 = vpop.xlane.xlu2 %47  ;;  %v42_v35 = vpop.xlane.xlu1 %41 }
  0x77   :  { %vm84_vm1 = vcmp.eq.f32.partialorder %v17_v1, %v42_v35  ;;  %v36_v36 = vpop.xlane.xlu0 %35  ;;  %vm86_vm3 = vcmp.eq.f32.partialorder %v679_v0, %v48_v34 }
  0x78   :  { %v100_v37 = vsel %vm84_vm1, %v783_v33, 2147483647  ;;  %vm82_vm2 = vcmp.eq.f32.partialorder %v15_v2, %v36_v36  ;;  %v102_v53 = vsel %vm86_vm3, %v783_v33, 2147483647 }
  0x79   :  { %v787_v38 = vsel %vm33_vm0, %v100_v37, 2147483647  ;;  %v98_v39 = vsel %vm82_vm2, %v783_v33, 2147483647  ;;  %v826_v60 = vsel %vm33_vm0, %v102_v53, 2147483647 }
  0x7a   :  { %v791_v40 = vsel %vm33_vm0, %v98_v39, 2147483647  ;;  %v146_v41 = vshra.s32 %v787_v38, 16  ;;  %v176_v2 = vshra.s32 %v826_v60, 16 }
  0x7b   :  { %v116_v42 = vshra.s32 %v791_v40, 16 }
  0x7c   :  { %v795_v43 = vcvt.s32.f32 %v146_v41  ;;  %v853_v11 = vcvt.s32.f32 %v176_v2 }
  0x7d   :  { %v797_v44 = vcvt.s32.f32 %v116_v42 }
  0x7e   :  { %v51_v45 = vpop.xlane.xlu2 %50  ;;  %149 = vmin.xlane.f32.xlu2 %v795_v43  ;;  %v45_v46 = vpop.xlane.xlu1 %44 }
  0x7f   :  { %vm87_vm4 = vcmp.eq.f32.partialorder %v694_v6, %v51_v45  ;;  %vm85_vm5 = vcmp.eq.f32.partialorder %v699_v7, %v45_v46  ;;  %119 = vmin.xlane.f32.xlu1 %v797_v44  ;;  %v39_v47 = vpop.xlane.xlu0 %38 }
  0x80   :  { %v103_v48 = vsel %vm87_vm4, %v783_v33, 2147483647  ;;  %v101_v49 = vsel %vm85_vm5, %v783_v33, 2147483647  ;;  %vm83_vm6 = vcmp.eq.f32.partialorder %v704_v8, %v39_v47 }
  0x81   :  { %v808_v50 = vsel %vm33_vm0, %v103_v48, 2147483647  ;;  %v811_v51 = vsel %vm33_vm0, %v101_v49, 2147483647  ;;  %v99_v52 = vsel %vm83_vm6, %v783_v33, 2147483647 }
  0x82   :  { %v816_v54 = vsel %vm33_vm0, %v99_v52, 2147483647  ;;  %v191_v55 = vshra.s32 %v808_v50, 16  ;;  %v161_v56 = vshra.s32 %v811_v51, 16 }
  0x83   :  { %v131_v57 = vshra.s32 %v816_v54, 16 }
  0x84   :  { %v821_v58 = vcvt.s32.f32 %v191_v55  ;;  %v823_v59 = vcvt.s32.f32 %v161_v56 }
  0x85   :  { %v828_v61 = vcvt.s32.f32 %v131_v57 }
  0x86   :  { %v60_v62 = vpop.xlane.xlu2 %59  ;;  %194 = vmin.xlane.f32.xlu2 %v821_v58  ;;  %v57_v63 = vpop.xlane.xlu1 %56 }
  0x87   :  { %vm90_vm7 = vcmp.eq.f32.partialorder %v715_v12, %v60_v62  ;;  %164 = vmin.xlane.f32.xlu1 %v823_v59  ;;  %134 = vmin.xlane.f32.xlu0 %v828_v61  ;;  %v54_v0 = vpop.xlane.xlu0 %53  ;;  %vm89_vm8 = vcmp.eq.f32.partialorder %v720_v13, %v57_v63 }
  0x88   :  { %v106_v1 = vsel %vm90_vm7, %v783_v33, 2147483647  ;;  %vm88_vm9 = vcmp.eq.f32.partialorder %v725_v14, %v54_v0  ;;  %v105_v5 = vsel %vm89_vm8, %v783_v33, 2147483647  ;;  %v115_v0 = vand.u32 65535, %v791_v40 }
  0x89   :  { %v839_v3 = vsel %vm33_vm0, %v106_v1, 2147483647  ;;  %v104_v4 = vsel %vm88_vm9, %v783_v33, 2147483647  ;;  %v851_v10 = vsel %vm33_vm0, %v105_v5, 2147483647 }
  0x8a   :  { %v844_v6 = vsel %vm33_vm0, %v104_v4, 2147483647  ;;  %v236_v7 = vshra.s32 %v839_v3, 16  ;;  %v221_v15 = vshra.s32 %v851_v10, 16  ;;  %v117_v5 = vcvt.s32.f32 %v115_v0 }
  0x8b   :  { %v206_v8 = vshra.s32 %v844_v6, 16  ;;  %v160_v40 = vand.u32 65535, %v811_v51 }
  0x8c   :  { %v848_v9 = vcvt.s32.f32 %v236_v7  ;;  %v872_v23 = vcvt.s32.f32 %v221_v15 }
  0x8d   :  { %v855_v12 = vcvt.s32.f32 %v206_v8 }
  0x8e   :  { %v69_v13 = vpop.xlane.xlu2 %68  ;;  %239 = vmin.xlane.f32.xlu2 %v848_v9  ;;  %v66_v37 = vpop.xlane.xlu1 %65 }
  0x8f   :  { %vm93_vm10 = vcmp.eq.f32.partialorder %v736_v18, %v69_v13  ;;  %179 = vmin.xlane.f32.xlu0 %v853_v11  ;;  %209 = vmin.xlane.f32.xlu1 %v855_v12  ;;  %v63_v14 = vpop.xlane.xlu0 %62  ;;  %vm92_vm14 = vcmp.eq.f32.partialorder %v741_v19, %v66_v37  ;;  %v130_v13 = vand.u32 65535, %v816_v54  ;;  %v205_v54 = vand.u32 65535, %v844_v6 }
  0x90   :  { %v109_v16 = vsel %vm93_vm10, %v783_v33, 2147483647  ;;  %vm91_vm11 = vcmp.eq.f32.partialorder %v746_v20, %v63_v14  ;;  %v108_v47 = vsel %vm92_vm14, %v783_v33, 2147483647 }
  0x91   :  { %v865_v17 = vsel %vm33_vm0, %v109_v16, 2147483647  ;;  %v107_v21 = vsel %vm91_vm11, %v783_v33, 2147483647  ;;  %v909_v53 = vsel %vm33_vm0, %v108_v47, 2147483647 }
  0x92   :  { %v869_v22 = vsel %vm33_vm0, %v107_v21, 2147483647  ;;  %v281_v18 = vshra.s32 %v865_v17, 16 }
  0x93   :  { %v251_v27 = vshra.s32 %v869_v22, 16  ;;  %v250_v6 = vand.u32 65535, %v869_v22  ;;  %v235_v22 = vand.u32 65535, %v839_v3  ;;  %v280_v3 = vand.u32 65535, %v865_v17 }
  0x94   :  { %v875_v28 = vcvt.s32.f32 %v281_v18 }
  0x95   :  { %v877_v29 = vcvt.s32.f32 %v251_v27  ;;  %v175_v27 = vand.u32 65535, %v826_v60  ;;  %v220_v60 = vand.u32 65535, %v851_v10 }
  0x96   :  { %v78_v31 = vpop.xlane.xlu2 %77  ;;  %v75_v52 = vpop.xlane.xlu1 %74 }
  0x97   :  { %vm96_vm12 = vcmp.eq.f32.partialorder %v757_v24, %v78_v31  ;;  %224 = vmin.xlane.f32.xlu0 %v872_v23  ;;  %284 = vmin.xlane.f32.xlu1 %v875_v28  ;;  %v72_v20 = vpop.xlane.xlu0 %71  ;;  %vm95_vm1 = vcmp.eq.f32.partialorder %v762_v25, %v75_v52  ;;  %v145_v25 = vand.u32 65535, %v787_v38  ;;  %v190_v38 = vand.u32 65535, %v808_v50 }
  0x98   :  { %v112_v34 = vsel %vm96_vm12, %v783_v33, 2147483647  ;;  %254 = vmin.xlane.f32.xlu2 %v877_v29  ;;  %vm94_vm13 = vcmp.eq.f32.partialorder %v767_v26, %v72_v20  ;;  %v111_v55 = vsel %vm95_vm1, %v783_v33, 2147483647  ;;  %v132_v50 = vcvt.s32.f32 %v130_v13 }
  0x99   :  { %v886_v35 = vsel %vm33_vm0, %v112_v34, 2147483647  ;;  %v110_v36 = vsel %vm94_vm13, %v783_v33, 2147483647  ;;  %v920_v57 = vsel %vm33_vm0, %v111_v55, 2147483647  ;;  %v147_v2 = vcvt.s32.f32 %v145_v25 }
  0x9a   :  { %v890_v39 = vsel %vm33_vm0, %v110_v36, 2147483647  ;;  %v326_v24 = vshra.s32 %v886_v35, 16  ;;  %v311_v62 = vshra.s32 %v920_v57, 16  ;;  %v192_v15 = vcvt.s32.f32 %v190_v38 }
  0x9b   :  { %v296_v41 = vshra.s32 %v890_v39, 16  ;;  %v177_v34 = vcvt.s32.f32 %v175_v27  ;;  %v295_v10 = vand.u32 65535, %v890_v39  ;;  %v282_v55 = vcvt.s32.f32 %v280_v3 }
  0x9c   :  { %v894_v42 = vcvt.s32.f32 %v326_v24  ;;  %v924_v63 = vcvt.s32.f32 %v311_v62  ;;  %v222_v24 = vcvt.s32.f32 %v220_v60  ;;  %v265_v25 = vand.u32 65535, %v909_v53 }
  0x9d   :  { %v896_v45 = vcvt.s32.f32 %v296_v41  ;;  %v297_v47 = vcvt.s32.f32 %v295_v10  ;;  %v325_v17 = vand.u32 65535, %v886_v35  ;;  %v1012_v27 = vshrl.u32 %v31_v32, 7 }
  0x9f   :  { %329 = vmin.xlane.f32.xlu1 %v894_v42  ;;  %v81_v26 = vpop.xlane.xlu0 %80 }
  0xa0   :  { %299 = vmin.xlane.f32.xlu2 %v896_v45  ;;  %vm97_vm15 = vcmp.eq.f32.partialorder %v778_v30, %v81_v26  ;;  %v266_v30 = vshra.s32 %v909_v53, 16  ;;  %v252_v26 = vcvt.s32.f32 %v250_v6  ;;  %v310_v53 = vand.u32 65535, %v920_v57 }
  0xa1   :  { %v113_v46 = vsel %vm97_vm15, %v783_v33, 2147483647 }
  0xa2   :  { %v905_v48 = vsel %vm33_vm0, %v113_v46, 2147483647  ;;  %v917_v56 = vcvt.s32.f32 %v266_v30 }
  0xa3   :  { %v341_v49 = vshra.s32 %v905_v48, 16  ;;  %v340_v39 = vand.u32 65535, %v905_v48 }
  0xa5   :  { %v911_v19 = vcvt.s32.f32 %v341_v49  ;;  %v237_v49 = vcvt.s32.f32 %v235_v22 }
  0xa7   :  { %344 = vmin.xlane.f32.xlu0 %v911_v19 }
  0xaf   :  { %269 = vmin.xlane.f32.xlu0 %v917_v56 }
  0xb7   :  { %314 = vmin.xlane.f32.xlu0 %v924_v63 }
  0xf1   :  { %v929_v1 = vpop.xlane.xlu2 %149 }
  0xf2   :  { %v931_v4 = vpop.xlane.xlu1 %119  ;;  %vm151_vm0 = vcmp.eq.f32.partialorder %v795_v43, %v929_v1  ;;  %v162_v43 = vcvt.s32.f32 %v160_v40  ;;  %v156_v40 = vcvt.f32.s32 %v929_v1 }
  0xf3   :  { %vm121_vm2 = vcmp.eq.f32.partialorder %v797_v44, %v931_v4  ;;  %v152_v7 = vsel %vm151_vm0, %v147_v2, inf  ;;  %v327_v2 = vcvt.s32.f32 %v325_v17  ;;  %v126_v13 = vcvt.f32.s32 %v931_v4 }
  0xf4   :  { %v122_v8 = vsel %vm121_vm2, %v117_v5, inf  ;;  %153 = vmin.xlane.f32.xlu0 %v152_v7  ;;  %vm13_vm0 = vcmask 0   ;;  %vm372_vm2 = vcmp.lt.s32.totalorder %v1012_v27, 1 }
  0xf5   :  { %123 = vmin.xlane.f32.xlu2 %v122_v8  ;;  %v312_v8 = vcvt.s32.f32 %v310_v53 }
  0xf9   :  { %v940_v14 = vpop.xlane.xlu2 %194 }
  0xfa   :  { %v942_v16 = vpop.xlane.xlu1 %164  ;;  %v944_v21 = vpop.xlane.xlu0 %134  ;;  %vm196_vm3 = vcmp.eq.f32.partialorder %v821_v58, %v940_v14  ;;  %v201_v1 = vcvt.f32.s32 %v940_v14 }
  0xfb   :  { %vm166_vm4 = vcmp.eq.f32.partialorder %v823_v59, %v942_v16  ;;  %v197_v44 = vsel %vm196_vm3, %v192_v15, inf  ;;  %vm136_vm5 = vcmp.eq.f32.partialorder %v828_v61, %v944_v21  ;;  %v207_v59 = vcvt.s32.f32 %v205_v54 }
  0xfc   :  { %v167_v18 = vsel %vm166_vm4, %v162_v43, inf  ;;  %198 = vmin.xlane.f32.xlu0 %v197_v44  ;;  %v137_v51 = vsel %vm136_vm5, %v132_v50, inf  ;;  %v171_v57 = vcvt.f32.s32 %v942_v16  ;;  %v141_v43 = vcvt.f32.s32 %v944_v21 }
  0xfd   :  { %168 = vmin.xlane.f32.xlu2 %v167_v18  ;;  %138 = vmin.xlane.f32.xlu1 %v137_v51  ;;  %v664_v50 = vmov 4294967295   ;;  %v127_v18 = vshll.u32 %v126_v13, 16 }
  0xfe   :  { %14 = vst.msk [vmem:[#allocation2] sm:$0x1] %vm13_vm0, %v664_v50 }
 0x101   :  { %v954_v31 = vpop.xlane.xlu2 %239 }
 0x102   :  { %v956_v58 = vpop.xlane.xlu1 %209  ;;  %v958_v20 = vpop.xlane.xlu0 %179  ;;  %vm241_vm10 = vcmp.eq.f32.partialorder %v848_v9, %v954_v31  ;;  %v342_v9 = vcvt.s32.f32 %v340_v39 }
 0x103   :  { %vm211_vm6 = vcmp.eq.f32.partialorder %v855_v12, %v956_v58  ;;  %vm181_vm7 = vcmp.eq.f32.partialorder %v853_v11, %v958_v20  ;;  %v242_v52 = vsel %vm241_vm10, %v237_v49, inf  ;;  %v216_v60 = vcvt.f32.s32 %v956_v58 }
 0x104   :  { %v212_v61 = vsel %vm211_vm6, %v207_v59, inf  ;;  %v182_v36 = vsel %vm181_vm7, %v177_v34, inf  ;;  %v172_v59 = vshll.u32 %v171_v57, 16  ;;  %v186_v14 = vcvt.f32.s32 %v958_v20 }
 0x105   :  { %213 = vmin.xlane.f32.xlu2 %v212_v61  ;;  %183 = vmin.xlane.f32.xlu1 %v182_v36  ;;  %v142_v61 = vshll.u32 %v141_v43, 16 }
 0x10a   :  { %v966_v37 = vpop.xlane.xlu0 %224 }
 0x10b   :  { %v968_v41 = vpop.xlane.xlu2 %254  ;;  %vm226_vm8 = vcmp.eq.f32.partialorder %v872_v23, %v966_v37  ;;  %v982_v23 = vpop.xlane.xlu1 %284  ;;  %v231_v53 = vcvt.f32.s32 %v966_v37 }
 0x10c   :  { %vm256_vm9 = vcmp.eq.f32.partialorder %v877_v29, %v968_v41  ;;  %v227_v11 = vsel %vm226_vm8, %v222_v24, inf  ;;  %vm286_vm12 = vcmp.eq.f32.partialorder %v875_v28, %v982_v23  ;;  %v267_v28 = vcvt.s32.f32 %v265_v25 }
 0x10d   :  { %v257_v12 = vsel %vm256_vm9, %v252_v26, inf  ;;  %228 = vmin.xlane.f32.xlu1 %v227_v11  ;;  %v287_v62 = vsel %vm286_vm12, %v282_v55, inf  ;;  %v202_v11 = vshll.u32 %v201_v1, 16  ;;  %v187_v55 = vshll.u32 %v186_v14, 16 }
 0x10e   :  { %258 = vmin.xlane.f32.xlu2 %v257_v12  ;;  %v232_v13 = vshll.u32 %v231_v53, 16 }
 0x113   :  { %v978_v46 = vpop.xlane.xlu2 %299  ;;  %v993_v0 = vpop.xlane.xlu1 %329 }
 0x114   :  { %vm301_vm11 = vcmp.eq.f32.partialorder %v896_v45, %v978_v46  ;;  %vm331_vm14 = vcmp.eq.f32.partialorder %v894_v42, %v993_v0  ;;  %v663_v42 = vmov 0  }
 0x115   :  { %v302_v29 = vsel %vm301_vm11, %v297_v47, inf  ;;  %243 = vmin.xlane.f32.xlu1 %v242_v52  ;;  %v332_v5 = vsel %vm331_vm14, %v327_v2, inf  ;;  %634 = vset.pattern.permute.xlu2 %v663_v42  ;;  %v217_v47 = vshll.u32 %v216_v60, 16 }
 0x116   :  { %303 = vmin.xlane.f32.xlu2 %v302_v29  ;;  %633 = vset.pattern.permute.xlu1 %v663_v42 }
 0x117   :  { %635 = vset.pattern.permute.xlu0 %v663_v42 }
 0x11a   :  { %v986_v30 = vpop.xlane.xlu0 %344 }
 0x11b   :  { %vm346_vm13 = vcmp.eq.f32.partialorder %v911_v19, %v986_v30 }
 0x11c   :  { %v347_v45 = vsel %vm346_vm13, %v342_v9, inf }
 0x11d   :  { %288 = vmin.xlane.f32.xlu1 %v287_v62 }
 0x11e   :  { %348 = vmin.xlane.f32.xlu2 %v347_v45 }
 0x122   :  { %v996_v48 = vpop.xlane.xlu0 %269 }
 0x123   :  { %vm271_vm15 = vcmp.eq.f32.partialorder %v917_v56, %v996_v48 }
 0x124   :  { %v272_v19 = vsel %vm271_vm15, %v267_v28, inf }
 0x125   :  { %273 = vmin.xlane.f32.xlu0 %v272_v19  ;;  %333 = vmin.xlane.f32.xlu1 %v332_v5 }
 0x12a   :  { %v1003_v7 = vpop.xlane.xlu0 %314 }
 0x12b   :  { %vm316_vm1 = vcmp.eq.f32.partialorder %v924_v63, %v1003_v7  ;;  %v157_v63 = vshll.u32 %v156_v40, 16  ;;  %v321_v37 = vcvt.f32.s32 %v1003_v7 }
 0x12c   :  { %v317_v35 = vsel %vm316_vm1, %v312_v8, inf }
 0x12d   :  { %318 = vmin.xlane.f32.xlu0 %v317_v35 }
 0x167   :  { %v154_v38 = vpop.xlane.xlu0 %153 }
 0x168   :  { %v124_v56 = vpop.xlane.xlu2 %123  ;;  %v155_v15 = vcvt.f32.s32 %v154_v38 }
 0x169   :  { %v125_v44 = vcvt.f32.s32 %v124_v56 }
 0x16a   :  { %v158_v4 = vadd.s32 %v157_v63, %v155_v15  ;;  %v261_v63 = vcvt.f32.s32 %v968_v41 }
 0x16b   :  { %v1015_v36 = vadd.s32 %v127_v18, %v125_v44 }
 0x16c   :  { %v356_v32 = vrot.slane %v158_v4, 7  ;;  %vm456_vm10 = vcmp.ne.s32.totalorder %v158_v4, 0 }
 0x16d   :  { %v354_v10 = vrot.slane %v1015_v36, 7 }
 0x16f   :  { %v199_v54 = vpop.xlane.xlu0 %198 }
 0x170   :  { %v169_v51 = vpop.xlane.xlu2 %168  ;;  %v139_v16 = vpop.xlane.xlu1 %138  ;;  %v200_v24 = vcvt.f32.s32 %v199_v54 }
 0x171   :  { %v170_v34 = vcvt.f32.s32 %v169_v51  ;;  %v140_v21 = vcvt.f32.s32 %v139_v16  ;;  %v246_v51 = vcvt.f32.s32 %v954_v31  ;;  %v306_v31 = vcvt.f32.s32 %v978_v46 }
 0x172   :  { %v1021_v49 = vadd.s32 %v202_v11, %v200_v24 }
 0x173   :  { %v173_v6 = vadd.s32 %v172_v59, %v170_v34  ;;  %v143_v26 = vadd.s32 %v142_v61, %v140_v21  ;;  %v262_v59 = vshll.u32 %v261_v63, 16  ;;  %v247_v41 = vshll.u32 %v246_v51, 16 }
 0x174   :  { %v359_v5 = vrot.slane %v1021_v49, 7 }
 0x175   :  { %v357_v12 = vrot.slane %v173_v6, 7  ;;  %v355_v22 = vrot.slane %v143_v26, 7  ;;  %vm457_vm4 = vcmp.ne.s32.totalorder %v173_v6, 0  ;;  %vm455_vm6 = vcmp.ne.s32.totalorder %v143_v26, 0 }
 0x177   :  { %v385_v29 = vsel %vm372_vm2, %v356_v32, %v357_v12  ;;  %v387_v52 = vsel %vm372_vm2, %v354_v10, %v355_v22  ;;  %v386_v39 = vsel %vm372_vm2, %v355_v22, %v356_v32  ;;  %v307_v22 = vshll.u32 %v306_v31, 16 }
 0x178   :  { %v214_v58 = vpop.xlane.xlu2 %213  ;;  %vm441_vm3 = vcmp.ne.s32.totalorder %v173_v6, %v385_v29  ;;  %v184_v3 = vpop.xlane.xlu1 %183  ;;  %vm439_vm5 = vcmp.ne.s32.totalorder %v143_v26, %v387_v52  ;;  %vm440_vm7 = vcmp.ne.s32.totalorder %v158_v4, %v386_v39 }
 0x179   :  { %v215_v20 = vcvt.f32.s32 %v214_v58  ;;  %vm1031_vm8 = vmand %vm441_vm3, %vm457_vm4  ;;  %v185_v45 = vcvt.f32.s32 %v184_v3  ;;  %vm459_vm4 = vcmp.ne.s32.totalorder %v1021_v49, 0  ;;  %v276_v3 = vcvt.f32.s32 %v996_v48 }
 0x17a   :  { %vm471_vm9 = vmand %vm439_vm5, %vm455_vm6  ;;  %v489_v62 = vsel %vm1031_vm8, %v173_v6, 4294967295  ;;  %v291_v6 = vcvt.f32.s32 %v982_v23 }
 0x17b   :  { %v218_v25 = vadd.s32 %v217_v47, %v215_v20  ;;  %v487_v17 = vsel %vm471_vm9, %v143_v26, 4294967295  ;;  %vm472_vm11 = vmand %vm440_vm7, %vm456_vm10  ;;  %v188_v28 = vadd.s32 %v187_v55, %v185_v45  ;;  %v351_v26 = vcvt.f32.s32 %v986_v30  ;;  %v636_v20 = vld [vmem:[#allocation2] ss:$0 sm:$0xff] }
 0x17c   :  { %506 = vperm.xlu1 %633, %v487_v17   ;;  %v488_v2 = vsel %vm472_vm11, %v158_v4, 4294967295  ;;  %v292_v14 = vshll.u32 %v291_v6, 16 }
 0x17d   :  { %509 = vperm.xlu2 %634, %v488_v2   ;;  %v360_v19 = vrot.slane %v218_v25, 7  ;;  %v358_v8 = vrot.slane %v188_v28, 7  ;;  %vm460_vm13 = vcmp.ne.s32.totalorder %v218_v25, 0  ;;  %vm458_vm15 = vcmp.ne.s32.totalorder %v188_v28, 0 }
 0x17e   :  { %v277_v2 = vshll.u32 %v276_v3, 16  ;;  %v583_v3 = vadd.s32 4294967224, %v783_v33 }
 0x17f   :  { %v382_v35 = vsel %vm372_vm2, %v359_v5, %v360_v19  ;;  %v384_v42 = vsel %vm372_vm2, %v357_v12, %v358_v8  ;;  %v383_v38 = vsel %vm372_vm2, %v358_v8, %v359_v5 }
 0x180   :  { %vm444_vm12 = vcmp.ne.s32.totalorder %v218_v25, %v382_v35  ;;  %v229_v40 = vpop.xlane.xlu1 %228  ;;  %vm442_vm14 = vcmp.ne.s32.totalorder %v188_v28, %v384_v42  ;;  %vm443_vm1 = vcmp.ne.s32.totalorder %v1021_v49, %v383_v38 }
 0x181   :  { %v259_v56 = vpop.xlane.xlu2 %258  ;;  %vm1046_vm0 = vmand %vm444_vm12, %vm460_vm13  ;;  %v230_v57 = vcvt.f32.s32 %v229_v40 }
 0x182   :  { %vm474_vm3 = vmand %vm442_vm14, %vm458_vm15  ;;  %v492_v15 = vsel %vm1046_vm0, %v218_v25, 4294967295  ;;  %v260_v54 = vcvt.f32.s32 %v259_v56  ;;  %vm612_vm15 = vcmask 7175  }
 0x183   :  { %v490_v43 = vsel %vm474_vm3, %v188_v28, 4294967295  ;;  %vm1053_vm5 = vmand %vm443_vm1, %vm459_vm4  ;;  %v233_v50 = vadd.s32 %v232_v13, %v230_v57  ;;  %vm404_vm1 = vcmp.eq.s32.totalorder %v1012_v27, 0  ;;  %v551_v27 = vadd.s32 4294967288, %v783_v33 }
 0x184   :  { %515 = vperm.xlu1 %633, %v490_v43   ;;  %v491_v18 = vsel %vm1053_vm5, %v1021_v49, 4294967295  ;;  %v1064_v61 = vadd.s32 %v262_v59, %v260_v54  ;;  %v352_v49 = vshll.u32 %v351_v26, 16 }
 0x185   :  { %512 = vperm.xlu2 %634, %v489_v62   ;;  %v361_v1 = vrot.slane %v233_v50, 7  ;;  %vm461_vm7 = vcmp.ne.s32.totalorder %v233_v50, 0  ;;  %v336_v62 = vcvt.f32.s32 %v993_v0 }
 0x186   :  { %v363_v12 = vrot.slane %v1064_v61, 7  ;;  %vm463_vm13 = vcmp.ne.s32.totalorder %v1064_v61, 0 }
 0x187   :  { %v381_v4 = vsel %vm372_vm2, %v360_v19, %v361_v1  ;;  %v337_v35 = vshll.u32 %v336_v62, 16 }
 0x188   :  { %v244_v16 = vpop.xlane.xlu1 %243  ;;  %vm445_vm6 = vcmp.ne.s32.totalorder %v233_v50, %v381_v4 }
 0x189   :  { %v304_v34 = vpop.xlane.xlu2 %303  ;;  %v245_v21 = vcvt.f32.s32 %v244_v16  ;;  %vm477_vm8 = vmand %vm445_vm6, %vm461_vm7  ;;  %vm454_vm6 = vcmp.ne.s32.totalorder %v1015_v36, 0 }
 0x18a   :  { %v493_v60 = vsel %vm477_vm8, %v233_v50, 4294967295  ;;  %v305_v11 = vcvt.f32.s32 %v304_v34 }
 0x18b   :  { %v248_v24 = vadd.s32 %v247_v41, %v245_v21  ;;  %524 = vperm.xlu0 %635, %v493_v60  }
 0x18c   :  { %521 = vperm.xlu1 %633, %v492_v15   ;;  %v1075_v30 = vadd.s32 %v307_v22, %v305_v11 }
 0x18d   :  { %518 = vperm.xlu2 %634, %v491_v18   ;;  %v362_v32 = vrot.slane %v248_v24, 7  ;;  %vm462_vm10 = vcmp.ne.s32.totalorder %v248_v24, 0 }
 0x18e   :  { %v366_v17 = vrot.slane %v1075_v30, 7  ;;  %vm466_vm3 = vcmp.ne.s32.totalorder %v1075_v30, 0 }
 0x18f   :  { %v380_v47 = vsel %vm372_vm2, %v361_v1, %v362_v32  ;;  %v379_v23 = vsel %vm372_vm2, %v362_v32, %v363_v12  ;;  %v555_v32 = vadd.s32 4294967280, %v783_v33 }
 0x190   :  { %v289_v46 = vpop.xlane.xlu1 %288  ;;  %vm446_vm9 = vcmp.ne.s32.totalorder %v248_v24, %v380_v47  ;;  %vm447_vm11 = vcmp.ne.s32.totalorder %v1064_v61, %v379_v23  ;;  %v567_v47 = vadd.s32 4294967256, %v783_v33 }
 0x191   :  { %v349_v29 = vpop.xlane.xlu2 %348  ;;  %v290_v58 = vcvt.f32.s32 %v289_v46  ;;  %vm478_vm12 = vmand %vm446_vm9, %vm462_vm10 }
 0x192   :  { %v350_v52 = vcvt.f32.s32 %v349_v29  ;;  %v494_v39 = vsel %vm478_vm12, %v248_v24, 4294967295  ;;  %vm479_vm14 = vmand %vm447_vm11, %vm463_vm13  ;;  %v579_v29 = vadd.s32 4294967232, %v783_v33 }
 0x193   :  { %v293_v9 = vadd.s32 %v292_v14, %v290_v58  ;;  %v495_v45 = vsel %vm479_vm14, %v1064_v61, 4294967295  ;;  %v563_v14 = vadd.s32 4294967264, %v783_v33 }
 0x194   :  { %v353_v55 = vadd.s32 %v352_v49, %v350_v52  ;;  %530 = vperm.xlu1 %633, %v495_v45   ;;  %v575_v52 = vadd.s32 4294967240, %v783_v33 }
 0x195   :  { %527 = vperm.xlu2 %634, %v494_v39   ;;  %v365_v25 = vrot.slane %v293_v9, 7  ;;  %vm465_vm9 = vcmp.ne.s32.totalorder %v293_v9, 0 }
 0x196   :  { %v369_v28 = vrot.slane %v353_v55, 7  ;;  %613 = vst.msk [vmem:[#allocation2 - $0x7] sm:$0x80] %vm612_vm15, %v353_v55  ;;  %vm469_vm12 = vcmp.ne.s32.totalorder %v353_v55, 0 }
 0x197   :  { %v376_v48 = vsel %vm372_vm2, %v365_v25, %v366_v17 }
 0x198   :  { %v274_v19 = vpop.xlane.xlu0 %273  ;;  %v388_v5 = vsel %vm372_vm2, %v369_v28, %v354_v10  ;;  %v334_v0 = vpop.xlane.xlu1 %333  ;;  %vm450_vm0 = vcmp.ne.s32.totalorder %v1075_v30, %v376_v48 }
 0x199   :  { %v275_v53 = vcvt.f32.s32 %v274_v19  ;;  %v422_v8 = vsel %vm404_vm1, %v636_v20, %v388_v5  ;;  %v335_v42 = vcvt.f32.s32 %v334_v0  ;;  %vm482_vm4 = vmand %vm450_vm0, %vm466_vm3  ;;  %v591_v0 = vadd.s32 4294967208, %v783_v33 }
 0x19a   :  { %vm438_vm5 = vcmp.ne.s32.totalorder %v1015_v36, %v422_v8  ;;  %v498_v56 = vsel %vm482_vm4, %v1075_v30, 4294967295  ;;  %v571_v30 = vadd.s32 4294967248, %v783_v33 }
 0x19b   :  { %v278_v38 = vadd.s32 %v277_v2, %v275_v53  ;;  %vm470_vm7 = vmand %vm438_vm5, %vm454_vm6  ;;  %v338_v40 = vadd.s32 %v337_v35, %v335_v42 }
 0x19c   :  { %v486_v10 = vsel %vm470_vm7, %v1015_v36, 4294967295  ;;  %539 = vperm.xlu1 %633, %v498_v56   ;;  %v322_v36 = vshll.u32 %v321_v37, 16 }
 0x19d   :  { %503 = vperm.xlu0 %635, %v486_v10   ;;  %v364_v13 = vrot.slane %v278_v38, 7  ;;  %v368_v57 = vrot.slane %v338_v40, 7  ;;  %vm464_vm15 = vcmp.ne.s32.totalorder %v278_v38, 0  ;;  %vm468_vm3 = vcmp.ne.s32.totalorder %v338_v40, 0 }
 0x19e   :  { %v595_v10 = vadd.s32 4294967200, %v783_v33 }
 0x19f   :  { %v377_v15 = vsel %vm372_vm2, %v364_v13, %v365_v25  ;;  %v378_v43 = vsel %vm372_vm2, %v363_v12, %v364_v13  ;;  %v373_v63 = vsel %vm372_vm2, %v368_v57, %v369_v28  ;;  %v559_v12 = vadd.s32 4294967272, %v783_v33 }
 0x1a0   :  { %v319_v44 = vpop.xlane.xlu0 %318  ;;  %vm449_vm8 = vcmp.ne.s32.totalorder %v293_v9, %v377_v15  ;;  %vm448_vm10 = vcmp.ne.s32.totalorder %v278_v38, %v378_v43  ;;  %vm453_vm11 = vcmp.ne.s32.totalorder %v353_v55, %v373_v63  ;;  %v587_v25 = vadd.s32 4294967216, %v783_v33 }
 0x1a1   :  { %v320_v50 = vcvt.f32.s32 %v319_v44  ;;  %vm481_vm13 = vmand %vm449_vm8, %vm465_vm9  ;;  %vm557_vm8 = vcmask 195712   ;;  %vm561_vm9 = vcmask 261312   ;;  %v603_v15 = vadd.s32 4294967184, %v783_v33 }
 0x1a2   :  { %vm485_vm14 = vmand %vm453_vm11, %vm469_vm12  ;;  %v497_v7 = vsel %vm481_vm13, %v293_v9, 4294967295  ;;  %vm569_vm11 = vcmask 392512   ;;  %vm573_vm12 = vcmask 458112   ;;  %vm577_vm13 = vcmask 523712  }
 0x1a3   :  { %v323_v18 = vadd.s32 %v322_v36, %v320_v50  ;;  %v501_v51 = vsel %vm485_vm14, %v353_v55, 4294967295  ;;  %536 = vperm.xlu2 %634, %v497_v7   ;;  %vm480_vm1 = vmand %vm448_vm10, %vm464_vm15  ;;  %vm565_vm10 = vcmask 326912   ;;  %vm581_vm14 = vcmask 589312  }
 0x1a4   :  { %v496_v54 = vsel %vm480_vm1, %v278_v38, 4294967295  ;;  %548 = vperm.xlu1 %633, %v501_v51   ;;  %vm585_vm15 = vcmask 654912   ;;  %vm589_vm1 = vcmask 720512   ;;  %v607_v44 = vadd.s32 4294967176, %v783_v33 }
 0x1a5   :  { %533 = vperm.xlu0 %635, %v496_v54   ;;  %v367_v1 = vrot.slane %v323_v18, 7  ;;  %vm467_vm6 = vcmp.ne.s32.totalorder %v323_v18, 0 }
 0x1a7   :  { %v374_v59 = vsel %vm372_vm2, %v367_v1, %v368_v57  ;;  %v375_v4 = vsel %vm372_vm2, %v366_v17, %v367_v1  ;;  %vm553_vm2 = vcmask 130112   ;;  %v599_v57 = vadd.s32 4294967192, %v783_v33 }
 0x1a8   :  { %vm452_vm0 = vcmp.ne.s32.totalorder %v338_v40, %v374_v59  ;;  %vm451_vm4 = vcmp.ne.s32.totalorder %v323_v18, %v375_v4 }
 0x1a9   :  { %vm484_vm5 = vmand %vm452_vm0, %vm468_vm3  ;;  %vm593_vm0 = vcmask 786112   ;;  %vm597_vm3 = vcmask 851712  }
 0x1aa   :  { %v500_v34 = vsel %vm484_vm5, %v338_v40, 4294967295  ;;  %vm483_vm7 = vmand %vm451_vm4, %vm467_vm6  ;;  %vm601_vm4 = vcmask 917312   ;;  %vm605_vm5 = vcmask 982912   ;;  %vm609_vm6 = vcmask 1048512  }
 0x1ab   :  { %545 = vperm.xlu2 %634, %v500_v34   ;;  %v499_v16 = vsel %vm483_vm7, %v323_v18, 4294967295 }
 0x1ad   :  { %542 = vperm.xlu0 %635, %v499_v16  }
 0x1d7   :  { %v510_v41 = vpop.permute.xlu2 %509 }
 0x1d8   :  { %v556_v46 = vperm.slane %v510_v41, %v555_v32 }
 0x1df   :  { %v513_v60 = vpop.permute.xlu2 %512 }
 0x1e0   :  { %v560_v58 = vperm.slane %v513_v60, %v559_v12 }
 0x1e7   :  { %v519_v31 = vpop.permute.xlu2 %518 }
 0x1e8   :  { %v568_v55 = vperm.slane %v519_v31, %v567_v47 }
 0x1ee   :  { %v507_v61 = vpop.permute.xlu1 %506 }
 0x1ef   :  { %v528_v11 = vpop.permute.xlu2 %527  ;;  %v552_v23 = vperm.slane %v507_v61, %v551_v27 }
 0x1f0   :  { %v580_v5 = vperm.slane %v528_v11, %v579_v29 }
 0x1f6   :  { %v516_v21 = vpop.permute.xlu1 %515 }
 0x1f7   :  { %v564_v20 = vperm.slane %v516_v21, %v563_v14 }
 0x1fd   :  { %v525_v24 = vpop.permute.xlu0 %524  ;;  %v537_v45 = vpop.permute.xlu2 %536 }
 0x1fe   :  { %v522_v6 = vpop.permute.xlu1 %521  ;;  %v576_v19 = vperm.slane %v525_v24, %v575_v52  ;;  %v592_v13 = vperm.slane %v537_v45, %v591_v0 }
 0x1ff   :  { %v572_v17 = vperm.slane %v522_v6, %v571_v30 }
 0x205   :  { %v546_v43 = vpop.permute.xlu2 %545 }
 0x206   :  { %v531_v26 = vpop.permute.xlu1 %530  ;;  %v604_v51 = vperm.slane %v546_v43, %v603_v15 }
 0x207   :  { %v584_v35 = vperm.slane %v531_v26, %v583_v3 }
 0x20e   :  { %v540_v28 = vpop.permute.xlu1 %539 }
 0x20f   :  { %v504_v22 = vpop.permute.xlu0 %503  ;;  %v596_v36 = vperm.slane %v540_v28, %v595_v10 }
 0x210   :  { %v550_v49 = vperm.slane %v504_v22, %v783_v33 }
 0x212   :  { %v554_v39 = vsel %vm553_vm2, %v552_v23, %v550_v49 }
 0x213   :  { %v558_v9 = vsel %vm557_vm8, %v556_v46, %v554_v39 }
 0x214   :  { %v562_v62 = vsel %vm561_vm9, %v560_v58, %v558_v9 }
 0x215   :  { %v566_v2 = vsel %vm565_vm10, %v564_v20, %v562_v62 }
 0x216   :  { %v570_v48 = vsel %vm569_vm11, %v568_v55, %v566_v2  ;;  %v549_v50 = vpop.permute.xlu1 %548 }
 0x217   :  { %v574_v53 = vsel %vm573_vm12, %v572_v17, %v570_v48  ;;  %v534_v8 = vpop.permute.xlu0 %533  ;;  %v608_v1 = vperm.slane %v549_v50, %v607_v44 }
 0x218   :  { %v578_v42 = vsel %vm577_vm13, %v576_v19, %v574_v53  ;;  %v588_v38 = vperm.slane %v534_v8, %v587_v25 }
 0x219   :  { %v582_v56 = vsel %vm581_vm14, %v580_v5, %v578_v42 }
 0x21a   :  { %v586_v40 = vsel %vm585_vm15, %v584_v35, %v582_v56 }
 0x21b   :  { %v590_v37 = vsel %vm589_vm1, %v588_v38, %v586_v40 }
 0x21c   :  { %v594_v63 = vsel %vm593_vm0, %v592_v13, %v590_v37 }
 0x21d   :  { %v598_v54 = vsel %vm597_vm3, %v596_v36, %v594_v63 }
 0x21f   :  { %v543_v7 = vpop.permute.xlu0 %542 }
 0x220   :  { %v600_v18 = vperm.slane %v543_v7, %v599_v57 }
 0x222   :  { %v602_v59 = vsel %vm601_vm4, %v600_v18, %v598_v54 }
 0x223   :  { %v606_v33 = vsel %vm605_vm5, %v604_v51, %v602_v59 }
 0x224   :  { %v610_v4 = vsel %vm609_vm6, %v608_v1, %v606_v33 }
 0x225   :  { %611 = vst [vmem:[#allocation3] sm:$0x1] %v610_v4 }
 0x226   :  { %624 = dma.vmem_to_hbm [thread:$0]  %s620_s9, 16, %s622_s12, [#allocation4]  }
 0x227   :  { %661 = dma.done.wait [#allocation4], 16  }
 0x228   :  { %662 = vsyncadd [#allocation4], 4294967280 }
 0x229   :  { %629 = vsyncpa [#allocation4], 1 }

// kernel: tpu_custom_call.1
= control target key start
LH: loop header
LB: loop body
LE: loop exit
PB: predicated region body
PF: predicated region fallthrough
CT: control target
= control target key end

     0   :  { %6 = vsyncpa [#allocation4], 0  ;;  %s101_s9 = smov [#allocation3]   ;;  %s119_s0 = inlined_call_operand.hbm [shape: f32[8,32], index: 0, kind: input, shape index: {}]   ;;  %s120_s1 = inlined_call_operand.vmem [shape: s32[8,1], index: 1, kind: output, shape index: {}]  }
   0x1   :  { %s12_s8 = sshll.u32 %s119_s0, 4  ;;  %s14_s10 = sshll.u32 %s101_s9, 4  ;;  %s13_s8 = int_to_ptr.hbm [resolvable:$true] %s12_s8  ;;  %s15_s10 = int_to_ptr.vmem [resolvable:$true] %s14_s10 }
   0x2   :  { %17 = dma.hbm_to_vmem [thread:$0]  %s13_s8, 128, %s15_s10, [#allocation4]  }
   0x3   :  { %99 = dma.done.wait [#allocation4], 128  }
   0x4   :  { %100 = vsyncadd [#allocation4], 4294967168  ;;  %vm26_vm0 = vcmask 0   ;;  %v102_v0 = vmov 4294967295   ;;  %vm31_vm1 = vcmask 261120   ;;  %v28_v1 = vld [vmem:[#allocation3] sm:$0xff]  ;;  %v29_v3 = vlaneseq }
   0x5   :  { %27 = vst.msk [vmem:[#allocation2] sm:$0x1] %vm26_vm0, %v102_v0  ;;  %v32_v2 = vsel %vm31_vm1, %v28_v1, -inf  ;;  %vm65_vm4 = vcmask 7175   ;;  %vm63_vm6 = vcmask 7168  }
   0x6   :  { %33 = vmax.xlane.f32.xlu0 %v32_v2  ;;  %v30_v4 = vand.u32 127, %v29_v3  ;;  %v54_v15 = vshrl.u32 %v29_v3, 7 }
   0x8   :  { %vm55_vm5 = vcmp.eq.s32.totalorder %v54_v15, 0 }
   0xc   :  { %v74_v19 = vld [vmem:[#allocation2] ss:$0 sm:$0xff] }
  0x79   :  { %v34_v5 = vpop.xlane.xlu0 %33 }
  0x7a   :  { %vm35_vm2 = vcmp.eq.f32.partialorder %v28_v1, %v34_v5 }
  0x7b   :  { %v36_v6 = vsel %vm35_vm2, %v30_v4, 2147483647 }
  0x7c   :  { %v37_v7 = vsel %vm31_vm1, %v36_v6, 2147483647 }
  0x7d   :  { %v39_v8 = vshra.s32 %v37_v7, 16  ;;  %v38_v10 = vand.u32 65535, %v37_v7 }
  0x7f   :  { %v41_v9 = vcvt.s32.f32 %v39_v8  ;;  %v40_v12 = vcvt.s32.f32 %v38_v10 }
  0x81   :  { %42 = vmin.xlane.f32.xlu0 %v41_v9 }
  0xf4   :  { %v43_v11 = vpop.xlane.xlu0 %42 }
  0xf5   :  { %vm44_vm3 = vcmp.eq.f32.partialorder %v41_v9, %v43_v11  ;;  %v49_v14 = vcvt.f32.s32 %v43_v11 }
  0xf6   :  { %v45_v13 = vsel %vm44_vm3, %v40_v12, inf }
  0xf7   :  { %46 = vmin.xlane.f32.xlu1 %v45_v13  ;;  %v50_v17 = vshll.u32 %v49_v14, 16 }
 0x16a   :  { %v47_v16 = vpop.xlane.xlu1 %46 }
 0x16b   :  { %v48_v18 = vcvt.f32.s32 %v47_v16 }
 0x16d   :  { %v51_v20 = vadd.s32 %v50_v17, %v48_v18 }
 0x16f   :  { %v52_v21 = vrot.slane %v51_v20, 7  ;;  %66 = vst.msk [vmem:[#allocation2 - $0x7] sm:$0x80] %vm65_vm4, %v51_v20  ;;  %vm60_vm8 = vcmp.ne.s32.totalorder %v51_v20, 0 }
 0x171   :  { %v58_v22 = vsel %vm55_vm5, %v74_v19, %v52_v21 }
 0x172   :  { %vm59_vm7 = vcmp.ne.s32.totalorder %v51_v20, %v58_v22 }
 0x173   :  { %vm61_vm9 = vmand %vm59_vm7, %vm60_vm8 }
 0x174   :  { %v62_v23 = vsel %vm61_vm9, %v51_v20, 4294967295 }
 0x175   :  { %64 = vst.msk [vmem:[%s120_s1] sm:$0xff] %vm63_vm6, %v62_v23 }
 0x176   :  { %71 = vsyncpa [#allocation4], 1 }

</bundles_post_ra>
